<compile_context>
chip_gen: v5e
topology: v5e:2x2
jax: 0.10.0
libtpu: 0.0.40
codegen_flags: <defaults>
</compile_context>

<pallas_src>
import jax
import jax.numpy as jnp
from jax.experimental import pallas as pl
from jax.experimental.pallas import tpu as pltpu

INPUT_SIZE = 784
HIDDEN_SIZE = 500
HIDDEN_PAD = 512          # lane-dense hidden (multiple of 128)
NUM_CLASSES = 10
PADDED_CLASSES = 128      # lane-dense output (multiple of 128)


def mlp_kernel(x_ref, w1_ref, b1_ref, w2_ref, b2_ref, out_ref):
    # Layer 1: (TB, 784)bf16 @ (784, 512)bf16 on the MXU, f32 accumulate.
    h = jnp.dot(x_ref[...], w1_ref[...], preferred_element_type=jnp.float32)
    # Bias + ReLU in f32 on the VPU (lane-dense: 512 = 4 full vregs wide).
    h = jnp.maximum(h + b1_ref[...], 0.0)
    # Layer 2: (TB, 512)bf16 @ (512, 128)bf16 on the MXU, f32 accumulate.
    o = jnp.dot(h.astype(jnp.bfloat16), w2_ref[...],
                preferred_element_type=jnp.float32)
    out_ref[...] = (o + b2_ref[...]).astype(out_ref.dtype)


def _round_up(n, m):
    return ((n + m - 1) // m) * m


def _choose_batch_tile(batch):
    """Pick a batch tile: bf16-sublane aligned, minimal padding, >=2 steps when possible."""
    b16 = _round_up(max(batch, 16), 16)
    if b16 <= 256:
        # Tiny batch: a single tile; splitting only adds per-step overhead.
        return b16
    best_tb, best_cost = None, None
    for tb in (128, 256, 512, 1024):
        if tb > b16:
            continue
        b_pad = _round_up(b16, tb)
        steps = b_pad // tb
        # Primary: minimize wasted (padded) rows.  Secondary: prefer >=2 grid
        # steps (v7x megacore sharding).  Tertiary: prefer the largest tile
        # (amortizes ~0.35 us/step overhead on v5e/v6e).
        cost = (b_pad - b16, 0 if steps >= 2 else 1, -tb)
        if best_cost is None or cost < best_cost:
            best_tb, best_cost = tb, cost
    return best_tb


def prepare_params(w1_t, b1, w2_t, b2):
    """One-time (non-jitted-per-call) weight preprocessing.

    w1_t: (784, 500)  b1: (500,)  w2_t: (500, 10)  b2: (10,)
    Returns bf16/f32 padded tensors ready for the kernel.
    """
    # Layer-1 weight: bf16, hidden padded 500 -> 512 with zero columns.
    w1_p = jnp.zeros((INPUT_SIZE, HIDDEN_PAD), jnp.bfloat16)
    w1_p = w1_p.at[:, :HIDDEN_SIZE].set(w1_t.astype(jnp.bfloat16))
    # Layer-1 bias: f32, (1, 512), zero-padded (relu(0)=0, zero w2 rows -> no effect).
    b1_p = jnp.zeros((1, HIDDEN_PAD), jnp.float32)
    b1_p = b1_p.at[0, :HIDDEN_SIZE].set(b1.astype(jnp.float32))
    # Layer-2 weight: bf16, (512, 128), zero-padded rows and columns.
    w2_p = jnp.zeros((HIDDEN_PAD, PADDED_CLASSES), jnp.bfloat16)
    w2_p = w2_p.at[:HIDDEN_SIZE, :NUM_CLASSES].set(w2_t.astype(jnp.bfloat16))
    # Layer-2 bias: f32, (1, 128), zero-padded.
    b2_p = jnp.zeros((1, PADDED_CLASSES), jnp.float32)
    b2_p = b2_p.at[0, :NUM_CLASSES].set(b2.astype(jnp.float32))
    return (w1_p, b1_p, w2_p, b2_p)


@jax.jit
def neural_net_forward(x, params):
    """x: (B, 784) f32.  params: output of prepare_params."""
    w1_p, b1_p, w2_p, b2_p = params
    B = x.shape[0]

    TB = _choose_batch_tile(B)
    B_pad = _round_up(B, TB)

    # Stream x in bf16 (dominant HBM stream); pad the batch to a whole grid.
    x_bf = x.astype(jnp.bfloat16)
    if B_pad != B:
        x_bf = jnp.pad(x_bf, ((0, B_pad - B), (0, 0)))

    grid = (B_pad // TB,)

    out_padded = pl.pallas_call(
        mlp_kernel,
        out_shape=jax.ShapeDtypeStruct((B_pad, PADDED_CLASSES), jnp.float32),
        grid=grid,
        in_specs=[
            # x: tiled along the batch axis (double-buffered by the pipeline).
            pl.BlockSpec((TB, INPUT_SIZE), lambda i: (i, 0)),
            # Weights / biases: constant block index -> fetched once, resident.
            pl.BlockSpec((INPUT_SIZE, HIDDEN_PAD), lambda i: (0, 0)),
            pl.BlockSpec((1, HIDDEN_PAD), lambda i: (0, 0)),
            pl.BlockSpec((HIDDEN_PAD, PADDED_CLASSES), lambda i: (0, 0)),
            pl.BlockSpec((1, PADDED_CLASSES), lambda i: (0, 0)),
        ],
        out_specs=pl.BlockSpec((TB, PADDED_CLASSES), lambda i: (i, 0)),
        compiler_params=pltpu.CompilerParams(
            dimension_semantics=("parallel",),  # batch tiles shard across TCs on v7x
            vmem_limit_bytes=32 * 1024 * 1024,  # plenty; leaves v7x headroom
        ),
    )(x_bf, w1_p, b1_p, w2_p, b2_p)

    # Slice away batch padding and the lane padding of the class dimension.
    return out_padded[:B, :NUM_CLASSES]


def init_params(key):
    """Deterministic init mirroring nn.Linear's U(-1/sqrt(fan_in), 1/sqrt(fan_in))."""
    k1, k2, k3, k4 = jax.random.split(key, 4)
    bound1 = 1.0 / jnp.sqrt(INPUT_SIZE)
    bound2 = 1.0 / jnp.sqrt(HIDDEN_SIZE)
    # Stored pre-transposed: (in_features, out_features).
    w1_t = jax.random.uniform(k1, (INPUT_SIZE, HIDDEN_SIZE), jnp.float32,
                              -bound1, bound1)
    b1 = jax.random.uniform(k2, (HIDDEN_SIZE,), jnp.float32, -bound1, bound1)
    w2_t = jax.random.uniform(k3, (HIDDEN_SIZE, NUM_CLASSES), jnp.float32,
                              -bound2, bound2)
    b2 = jax.random.uniform(k4, (NUM_CLASSES,), jnp.float32, -bound2, bound2)
    return w1_t, b1, w2_t, b2


def _reference(x, w1_t, b1, w2_t, b2):
    return jnp.maximum(x @ w1_t + b1, 0.0) @ w2_t + b2


if __name__ == "__main__":
    key = jax.random.PRNGKey(0)
    k_x, k_x2, k_p = jax.random.split(key, 3)

    w1_t, b1, w2_t, b2 = init_params(k_p)
    params = prepare_params(w1_t, b1, w2_t, b2)   # one-time, outside the hot path

    # --- Small demo batch (single tile, grid=(1,)) ---
    B = 8
    x = jax.random.normal(k_x, (B, INPUT_SIZE), jnp.float32)
    out = jax.block_until_ready(neural_net_forward(x, params))
    ref = _reference(x, w1_t, b1, w2_t, b2)
    assert out.shape == (B, NUM_CLASSES)
    assert jnp.allclose(out, ref, atol=5e-2, rtol=5e-2), (
        f"max abs err {jnp.max(jnp.abs(out - ref))}")

    # --- Multi-tile + padded-tail coverage (B > TB, B % TB != 0) ---
    B2 = 300   # -> TB=128, grid=(3,), padded tail rows sliced away
    x2 = jax.random.normal(k_x2, (B2, INPUT_SIZE), jnp.float32)
    out2 = jax.block_until_ready(neural_net_forward(x2, params))
    ref2 = _reference(x2, w1_t, b1, w2_t, b2)
    assert out2.shape == (B2, NUM_CLASSES)
    assert jnp.allclose(out2, ref2, atol=5e-2, rtol=5e-2), (
        f"max abs err {jnp.max(jnp.abs(out2 - ref2))}")

    print("KERNEL_OK")
</pallas_src>

<mosaic_0001>
module attributes {stable_mosaic.version = 11 : i64} {
  func.func @mlp_kernel(%arg0: i32, %arg1: memref<16x784xbf16, #tpu.memory_space<vmem>>, %arg2: memref<784x512xbf16, #tpu.memory_space<vmem>>, %arg3: memref<1x512xf32, #tpu.memory_space<vmem>>, %arg4: memref<512x128xbf16, #tpu.memory_space<vmem>>, %arg5: memref<1x128xf32, #tpu.memory_space<vmem>>, %arg6: memref<16x128xf32, #tpu.memory_space<vmem>>) attributes {dimension_semantics = [#tpu.dimension_semantics<parallel>], iteration_bounds = array<i64: 1>, scalar_prefetch = 0 : i64, scratch_operands = 0 : i64, tpu.core_type = #tpu.core_type<tc>, window_params = [{transform_indices = @transform_0, window_bounds = array<i64: 16, 784>}, {pipeline_mode = #tpu.pipeline_mode<synchronous>, transform_indices = @transform_1, window_bounds = array<i64: 784, 512>}, {pipeline_mode = #tpu.pipeline_mode<synchronous>, transform_indices = @transform_2, window_bounds = array<i64: 1, 512>}, {pipeline_mode = #tpu.pipeline_mode<synchronous>, transform_indices = @transform_3, window_bounds = array<i64: 512, 128>}, {pipeline_mode = #tpu.pipeline_mode<synchronous>, transform_indices = @transform_4, window_bounds = array<i64: 1, 128>}, {transform_indices = @transform_5, window_bounds = array<i64: 16, 128>}]} {
    %c0 = arith.constant 0 : index
    %c0_0 = arith.constant 0 : index
    %0 = vector.load %arg1[%c0, %c0_0] : memref<16x784xbf16, #tpu.memory_space<vmem>>, vector<16x784xbf16>
    %c0_1 = arith.constant 0 : index
    %c0_2 = arith.constant 0 : index
    %1 = vector.load %arg2[%c0_1, %c0_2] : memref<784x512xbf16, #tpu.memory_space<vmem>>, vector<784x512xbf16>
    %cst = arith.constant dense<0.000000e+00> : vector<16x512xf32>
    %2 = tpu.matmul %0, %1, %cst {dimension_numbers = #tpu.dot_dimension_numbers<[1], [0], [0], [1], [0, 0, 1, 1], [], []>} : vector<16x784xbf16>, vector<784x512xbf16>, vector<16x512xf32> -> vector<16x512xf32>
    %c0_3 = arith.constant 0 : index
    %c0_4 = arith.constant 0 : index
    %3 = vector.load %arg3[%c0_3, %c0_4] : memref<1x512xf32, #tpu.memory_space<vmem>>, vector<1x512xf32>
    %4 = vector.broadcast %3 : vector<1x512xf32> to vector<16x512xf32>
    %5 = arith.addf %2, %4 : vector<16x512xf32>
    %cst_5 = arith.constant 0.000000e+00 : f32
    %6 = vector.broadcast %cst_5 : f32 to vector<16x512xf32>
    %7 = arith.maximumf %5, %6 : vector<16x512xf32>
    %8 = arith.truncf %7 : vector<16x512xf32> to vector<16x512xbf16>
    %c0_6 = arith.constant 0 : index
    %c0_7 = arith.constant 0 : index
    %9 = vector.load %arg4[%c0_6, %c0_7] : memref<512x128xbf16, #tpu.memory_space<vmem>>, vector<512x128xbf16>
    %cst_8 = arith.constant dense<0.000000e+00> : vector<16x128xf32>
    %10 = tpu.matmul %8, %9, %cst_8 {dimension_numbers = #tpu.dot_dimension_numbers<[1], [0], [0], [1], [0, 0, 1, 1], [], []>} : vector<16x512xbf16>, vector<512x128xbf16>, vector<16x128xf32> -> vector<16x128xf32>
    %c0_9 = arith.constant 0 : index
    %c0_10 = arith.constant 0 : index
    %11 = vector.load %arg5[%c0_9, %c0_10] : memref<1x128xf32, #tpu.memory_space<vmem>>, vector<1x128xf32>
    %12 = vector.broadcast %11 : vector<1x128xf32> to vector<16x128xf32>
    %13 = arith.addf %10, %12 : vector<16x128xf32>
    %c0_11 = arith.constant 0 : index
    %c0_12 = arith.constant 0 : index
    %14 = vector.load %arg6[%c0_11, %c0_12] : memref<16x128xf32, #tpu.memory_space<vmem>>, vector<16x128xf32>
    tpu.vector_store %arg6[%c0_11, %c0_12], %13 {strides = array<i32>} : memref<16x128xf32, #tpu.memory_space<vmem>>, vector<16x128xf32>,
    return
  }
  func.func @transform_0(%arg0: i32) -> (i32, i32) {
    %c0_i32 = arith.constant 0 : i32
    %c0_i32_0 = arith.constant 0 : i32
    return %arg0, %c0_i32 : i32, i32
  }
  func.func @transform_1(%arg0: i32) -> (i32, i32) {
    %c0_i32 = arith.constant 0 : i32
    %c0_i32_0 = arith.constant 0 : i32
    %c0_i32_1 = arith.constant 0 : i32
    return %c0_i32, %c0_i32_0 : i32, i32
  }
  func.func @transform_2(%arg0: i32) -> (i32, i32) {
    %c0_i32 = arith.constant 0 : i32
    %c0_i32_0 = arith.constant 0 : i32
    %c0_i32_1 = arith.constant 0 : i32
    return %c0_i32, %c0_i32_0 : i32, i32
  }
  func.func @transform_3(%arg0: i32) -> (i32, i32) {
    %c0_i32 = arith.constant 0 : i32
    %c0_i32_0 = arith.constant 0 : i32
    %c0_i32_1 = arith.constant 0 : i32
    return %c0_i32, %c0_i32_0 : i32, i32
  }
  func.func @transform_4(%arg0: i32) -> (i32, i32) {
    %c0_i32 = arith.constant 0 : i32
    %c0_i32_0 = arith.constant 0 : i32
    %c0_i32_1 = arith.constant 0 : i32
    return %c0_i32, %c0_i32_0 : i32, i32
  }
  func.func @transform_5(%arg0: i32) -> (i32, i32) {
    %c0_i32 = arith.constant 0 : i32
    %c0_i32_0 = arith.constant 0 : i32
    return %arg0, %c0_i32 : i32, i32
  }
}

</mosaic_0001>

<bundles_post_ra>
// kernel: neural_net_forward.1
= control target key start
LH: loop header
LB: loop body
LE: loop exit
PB: predicated region body
PF: predicated region fallthrough
CT: control target
= control target key end

     0   :  { %10 = vsyncpa [#allocation3], 0  ;;  %s3400_s0 = inlined_call_operand.vmem [shape: bf16[16,784], index: 0, kind: input, shape index: {}]   ;;  %s3401_s1 = inlined_call_operand.hbm [shape: bf16[784,512], index: 1, kind: input, shape index: {}]   ;;  %s3402_s2 = inlined_call_operand.vmem [shape: f32[1,512], index: 2, kind: input, shape index: {}]   ;;  %s3403_s3 = inlined_call_operand.hbm [shape: bf16[512,128], index: 3, kind: input, shape index: {}]   ;;  %s3404_s4 = inlined_call_operand.vmem [shape: f32[1,128], index: 4, kind: input, shape index: {}]   ;;  %s3405_s5 = inlined_call_operand.vmem [shape: f32[16,128], index: 5, kind: output, shape index: {}]  }
   0x1   :  { %s18_s20 = sshll.u32 %s3401_s1, 4  ;;  %s19_s20 = int_to_ptr.hbm [resolvable:$true] %s18_s20 }
   0x2   :  { %11 = vsyncpa [#allocation5], 0  ;;  %s3252_s21 = smov [#allocation2]   ;;  %s33_s25 = sshll.u32 %s3403_s3, 4  ;;  %s34_s25 = int_to_ptr.hbm [resolvable:$true] %s33_s25 }
   0x3   :  { %s20_s22 = sshll.u32 %s3252_s21, 4  ;;  %s3253_s26 = smov 256   ;;  %s21_s22 = int_to_ptr.vmem [resolvable:$true] %s20_s22 }
   0x4   :  { %s3254_s27 = smov 16   ;;  %s3255_s28 = smov [#allocation4]  }
   0x5   :  { %26 = dma.hbm_to_vmem [thread:$0]  %s19_s20, 25088, %s21_s22, [#allocation3], %s3253_s26, %s3253_s26, %s3254_s27  }
   0x6   :  { %s35_s29 = sshll.u32 %s3255_s28, 4  ;;  %s3256_s30 = smov 64   ;;  %s36_s29 = int_to_ptr.vmem [resolvable:$true] %s35_s29 }
   0x7   :  { %s3257_s6 = smov 4  }
   0x8   :  { %41 = dma.hbm_to_vmem [thread:$0]  %s34_s25, 4096, %s36_s29, [#allocation5], %s3256_s30, %s3256_s30, %s3257_s6  }
   0x9   :  { %3248 = dma.done.wait [#allocation3], 25088  }
   0xa   :  { %3249 = vsyncadd [#allocation3], 4294942208 }
   0xb   :  { %3250 = dma.done.wait [#allocation5], 4096  }
   0xc   :  { %3251 = vsyncadd [#allocation5], 4294963200  ;;  %v2156_v0 = vld [vmem:[#allocation2 + $0xe0] sm:$0xf]  ;;  %v2995_v1 = vld [vmem:[#allocation2 + $0xec] sm:$0xf0] }
   0xd   :  { %v2284_v2 = vld [vmem:[#allocation2 + $0x1e0] sm:$0xf]  ;;  %v2157_v3 = vor.u32 %v2995_v1, %v2156_v0  ;;  %v3027_v4 = vld [vmem:[#allocation2 + $0x1ec] sm:$0xf0]  ;;  %vm1282_vm0 = vcmask 130048  }
   0xe   :  { %v2412_v5 = vld [vmem:[#allocation2 + $0x2e0] sm:$0xf]  ;;  %v3059_v6 = vld [vmem:[#allocation2 + $0x2ec] sm:$0xf0]  ;;  %v2285_v7 = vor.u32 %v3027_v4, %v2284_v2 }
   0xf   :  { %v2413_v8 = vor.u32 %v3059_v6, %v2412_v5  ;;  %v2540_v9 = vld [vmem:[#allocation2 + $0x3e0] sm:$0xf]  ;;  %v3091_v10 = vld [vmem:[#allocation2 + $0x3ec] sm:$0xf0]  ;;  %1286 = vmatpush.bf16.msra.mxu0 %v2157_v3 }
  0x10   :  { %v2140_v11 = vld [vmem:[#allocation2 + $0xc0] sm:$0xf]  ;;  %v2541_v12 = vor.u32 %v3091_v10, %v2540_v9  ;;  %v2991_v13 = vld [vmem:[#allocation2 + $0xcc] sm:$0xf0]  ;;  %1300 = vmatpush.bf16.msra.mxu1 %v2285_v7 }
  0x11   :  { %v2268_v14 = vld [vmem:[#allocation2 + $0x1c0] sm:$0xf]  ;;  %v3023_v15 = vld [vmem:[#allocation2 + $0x1cc] sm:$0xf0]  ;;  %1314 = vmatpush.bf16.msra.mxu2 %v2413_v8  ;;  %v2141_v16 = vor.u32 %v2991_v13, %v2140_v11 }
  0x12   :  { %v2269_v17 = vor.u32 %v3023_v15, %v2268_v14  ;;  %v2396_v18 = vld [vmem:[#allocation2 + $0x2c0] sm:$0xf]  ;;  %v3055_v19 = vld [vmem:[#allocation2 + $0x2cc] sm:$0xf0]  ;;  %1328 = vmatpush.bf16.msra.mxu3 %v2541_v12 }
  0x13   :  { %v2524_v20 = vld [vmem:[#allocation2 + $0x3c0] sm:$0xf]  ;;  %v2397_v21 = vor.u32 %v3055_v19, %v2396_v18  ;;  %v3087_v22 = vld [vmem:[#allocation2 + $0x3cc] sm:$0xf0]  ;;  %1287 = vmatpush.bf16.msra.mxu0 %v2141_v16 }
  0x14   :  { %v2124_v23 = vld [vmem:[#allocation2 + $0xa0] sm:$0xf]  ;;  %v2987_v24 = vld [vmem:[#allocation2 + $0xac] sm:$0xf0]  ;;  %v2525_v25 = vor.u32 %v3087_v22, %v2524_v20  ;;  %1301 = vmatpush.bf16.msra.mxu1 %v2269_v17 }
  0x15   :  { %v2252_v26 = vld [vmem:[#allocation2 + $0x1a0] sm:$0xf]  ;;  %v3019_v27 = vld [vmem:[#allocation2 + $0x1ac] sm:$0xf0]  ;;  %v2125_v29 = vor.u32 %v2987_v24, %v2124_v23  ;;  %1315 = vmatpush.bf16.msra.mxu2 %v2397_v21 }
  0x16   :  { %v2380_v28 = vld [vmem:[#allocation2 + $0x2a0] sm:$0xf]  ;;  %v3051_v30 = vld [vmem:[#allocation2 + $0x2ac] sm:$0xf0]  ;;  %v2253_v33 = vor.u32 %v3019_v27, %v2252_v26  ;;  %1329 = vmatpush.bf16.msra.mxu3 %v2525_v25 }
  0x17   :  { %v2508_v31 = vld [vmem:[#allocation2 + $0x3a0] sm:$0xf]  ;;  %v3083_v32 = vld [vmem:[#allocation2 + $0x3ac] sm:$0xf0]  ;;  %v2381_v34 = vor.u32 %v3051_v30, %v2380_v28  ;;  %1288 = vmatpush.bf16.msra.mxu0 %v2125_v29 }
  0x18   :  { %v2108_v35 = vld [vmem:[#allocation2 + $0x80] sm:$0xf]  ;;  %v2983_v36 = vld [vmem:[#allocation2 + $0x8c] sm:$0xf0]  ;;  %v2509_v38 = vor.u32 %v3083_v32, %v2508_v31  ;;  %1302 = vmatpush.bf16.msra.mxu1 %v2253_v33  ;;  %v2993_v32 = vld [vmem:[#allocation2 + $0xe4] sm:$0xf] }
  0x19   :  { %v2236_v37 = vld [vmem:[#allocation2 + $0x180] sm:$0xf]  ;;  %v3015_v39 = vld [vmem:[#allocation2 + $0x18c] sm:$0xf0]  ;;  %v2109_v44 = vor.u32 %v2983_v36, %v2108_v35  ;;  %1316 = vmatpush.bf16.msra.mxu2 %v2381_v34  ;;  %v2158_v33 = vld [vmem:[#allocation2 + $0xf0] sm:$0xf0] }
  0x1a   :  { %v2364_v40 = vld [vmem:[#allocation2 + $0x280] sm:$0xf]  ;;  %v3047_v41 = vld [vmem:[#allocation2 + $0x28c] sm:$0xf0]  ;;  %v2237_v45 = vor.u32 %v3015_v39, %v2236_v37  ;;  %1330 = vmatpush.bf16.msra.mxu3 %v2509_v38  ;;  %v2024_v34 = vld [vmem:[%s3400_s0 + $0x8] sm:$0xf] }
  0x1b   :  { %v2492_v42 = vld [vmem:[#allocation2 + $0x380] sm:$0xf]  ;;  %v3079_v43 = vld [vmem:[#allocation2 + $0x38c] sm:$0xf0]  ;;  %v2365_v46 = vor.u32 %v3047_v41, %v2364_v40  ;;  %1289 = vmatpush.bf16.msra.mxu0 %v2109_v44  ;;  %v2962_v36 = vld [vmem:[%s3400_s0 + $0x20] sm:$0xf0] }
  0x1c   :  { %v2092_v47 = vld [vmem:[#allocation2 + $0x60] sm:$0xf]  ;;  %v2979_v48 = vld [vmem:[#allocation2 + $0x6c] sm:$0xf0]  ;;  %v2493_v50 = vor.u32 %v3079_v43, %v2492_v42  ;;  %1303 = vmatpush.bf16.msra.mxu1 %v2237_v45  ;;  %v3025_v41 = vld [vmem:[#allocation2 + $0x1e4] sm:$0xf] }
  0x1d   :  { %v2220_v49 = vld [vmem:[#allocation2 + $0x160] sm:$0xf]  ;;  %v3011_v51 = vld [vmem:[#allocation2 + $0x16c] sm:$0xf0]  ;;  %v2093_v56 = vor.u32 %v2979_v48, %v2092_v47  ;;  %1317 = vmatpush.bf16.msra.mxu2 %v2365_v46  ;;  %v2961_v43 = vld [vmem:[%s3400_s0 + $0x18] sm:$0xf0] }
  0x1e   :  { %v2348_v52 = vld [vmem:[#allocation2 + $0x260] sm:$0xf]  ;;  %v3043_v53 = vld [vmem:[#allocation2 + $0x26c] sm:$0xf0]  ;;  %v2221_v57 = vor.u32 %v3011_v51, %v2220_v49  ;;  %1331 = vmatpush.bf16.msra.mxu3 %v2493_v50  ;;  %v2286_v46 = vld [vmem:[#allocation2 + $0x1f0] sm:$0xf0]  ;;  %v2161_v50 = vor.u32 %v2993_v32, %v2158_v33 }
  0x1f   :  { %v2476_v54 = vld [vmem:[#allocation2 + $0x360] sm:$0xf]  ;;  %v3075_v55 = vld [vmem:[#allocation2 + $0x36c] sm:$0xf0]  ;;  %v2349_v58 = vor.u32 %v3043_v53, %v2348_v52  ;;  %1290 = vmatpush.bf16.msra.mxu0 %v2093_v56  ;;  %v2959_v47 = vld [vmem:[%s3400_s0 + $0xc] sm:$0xf] }
  0x20   :  { %v2076_v59 = vld [vmem:[#allocation2 + $0x40] sm:$0xf]  ;;  %v2975_v60 = vld [vmem:[#allocation2 + $0x4c] sm:$0xf0]  ;;  %v2477_v62 = vor.u32 %v3075_v55, %v2476_v54  ;;  %1304 = vmatpush.bf16.msra.mxu1 %v2221_v57  ;;  %v2026_v48 = vld [vmem:[%s3400_s0 + $0x24] sm:$0xf0]  ;;  %v3312_v54 = vor.u32 %v2962_v36, %v2024_v34 }
  0x21   :  { %v2204_v61 = vld [vmem:[#allocation2 + $0x140] sm:$0xf]  ;;  %v3007_v63 = vld [vmem:[#allocation2 + $0x14c] sm:$0xf0]  ;;  %v2077_v4 = vor.u32 %v2975_v60, %v2076_v59  ;;  %1318 = vmatpush.bf16.msra.mxu2 %v2349_v58  ;;  %v2989_v57 = vld [vmem:[#allocation2 + $0xc4] sm:$0xf]  ;;  %v3316_v60 = vor.u32 %v2959_v47, %v2026_v48 }
  0x22   :  { %v2332_v0 = vld [vmem:[#allocation2 + $0x240] sm:$0xf]  ;;  %v3039_v1 = vld [vmem:[#allocation2 + $0x24c] sm:$0xf0]  ;;  %v2205_v6 = vor.u32 %v3007_v63, %v2204_v61  ;;  %1332 = vmatpush.bf16.msra.mxu3 %v2477_v62  ;;  %v2142_v58 = vld [vmem:[#allocation2 + $0xd0] sm:$0xf0]  ;;  %v2289_v63 = vor.u32 %v3025_v41, %v2286_v46 }
  0x23   :  { %v2460_v2 = vld [vmem:[#allocation2 + $0x340] sm:$0xf]  ;;  %v3071_v3 = vld [vmem:[#allocation2 + $0x34c] sm:$0xf0]  ;;  %v2333_v7 = vor.u32 %v3039_v1, %v2332_v0  ;;  %1291 = vmatpush.bf16.msra.mxu0 %v2077_v4  ;;  %v2958_v61 = vld [vmem:[%s3400_s0 + $0x4] sm:$0xf]  ;;  %v2145_v4 = vor.u32 %v2989_v57, %v2142_v58 }
  0x24   :  { %v2060_v5 = vld [vmem:[#allocation2 + $0x20] sm:$0xf]  ;;  %v2971_v8 = vld [vmem:[#allocation2 + $0x2c] sm:$0xf0]  ;;  %v2461_v11 = vor.u32 %v3071_v3, %v2460_v2  ;;  %1305 = vmatpush.bf16.msra.mxu1 %v2205_v6  ;;  %v3021_v1 = vld [vmem:[#allocation2 + $0x1c4] sm:$0xf] }
  0x25   :  { %v2188_v9 = vld [vmem:[#allocation2 + $0x120] sm:$0xf]  ;;  %v3003_v10 = vld [vmem:[#allocation2 + $0x12c] sm:$0xf0]  ;;  %v2061_v18 = vor.u32 %v2971_v8, %v2060_v5  ;;  %1319 = vmatpush.bf16.msra.mxu2 %v2333_v7  ;;  %v2270_v2 = vld [vmem:[#allocation2 + $0x1d0] sm:$0xf0] }
  0x26   :  { %v2316_v12 = vld [vmem:[#allocation2 + $0x220] sm:$0xf]  ;;  %v3035_v13 = vld [vmem:[#allocation2 + $0x22c] sm:$0xf0]  ;;  %v2189_v23 = vor.u32 %v3003_v10, %v2188_v9  ;;  %1333 = vmatpush.bf16.msra.mxu3 %v2461_v11  ;;  %v2985_v10 = vld [vmem:[#allocation2 + $0xa4] sm:$0xf] }
  0x27   :  { %v2444_v14 = vld [vmem:[#allocation2 + $0x320] sm:$0xf]  ;;  %v3067_v15 = vld [vmem:[#allocation2 + $0x32c] sm:$0xf0]  ;;  %v2317_v24 = vor.u32 %v3035_v13, %v2316_v12  ;;  %1292 = vmatpush.bf16.msra.mxu0 %v2061_v18  ;;  %v2126_v11 = vld [vmem:[#allocation2 + $0xb0] sm:$0xf0]  ;;  %v2273_v12 = vor.u32 %v3021_v1, %v2270_v2 }
  0x28   :  { %v2044_v16 = vld [vmem:[#allocation2] sm:$0xf]  ;;  %v2967_v17 = vld [vmem:[#allocation2 + $0xc] sm:$0xf0]  ;;  %v2445_v28 = vor.u32 %v3067_v15, %v2444_v14  ;;  %1306 = vmatpush.bf16.msra.mxu1 %v2189_v23  ;;  %v3017_v14 = vld [vmem:[#allocation2 + $0x1a4] sm:$0xf] }
  0x29   :  { %v2172_v19 = vld [vmem:[#allocation2 + $0x100] sm:$0xf]  ;;  %v2999_v20 = vld [vmem:[#allocation2 + $0x10c] sm:$0xf0]  ;;  %v2045_v35 = vor.u32 %v2967_v17, %v2044_v16  ;;  %1320 = vmatpush.bf16.msra.mxu2 %v2317_v24  ;;  %v2254_v15 = vld [vmem:[#allocation2 + $0x1b0] sm:$0xf0]  ;;  %v2129_v17 = vor.u32 %v2985_v10, %v2126_v11 }
  0x2a   :  { %v2300_v21 = vld [vmem:[#allocation2 + $0x200] sm:$0xf]  ;;  %v3031_v22 = vld [vmem:[#allocation2 + $0x20c] sm:$0xf0]  ;;  %v2173_v39 = vor.u32 %v2999_v20, %v2172_v19  ;;  %1334 = vmatpush.bf16.msra.mxu3 %v2445_v28  ;;  %v2110_v23 = vld [vmem:[#allocation2 + $0x90] sm:$0xf0]  ;;  %v2257_v24 = vor.u32 %v3017_v14, %v2254_v15 }
  0x2b   :  { %v2428_v25 = vld [vmem:[#allocation2 + $0x300] sm:$0xf]  ;;  %v3063_v26 = vld [vmem:[#allocation2 + $0x30c] sm:$0xf0]  ;;  %v2301_v40 = vor.u32 %v3031_v22, %v2300_v21  ;;  %1293 = vmatpush.bf16.msra.mxu0 %v2045_v35  ;;  %v2981_v22 = vld [vmem:[#allocation2 + $0x84] sm:$0xf] }
  0x2c   :  { %v2668_v27 = vld [vmem:[#allocation2 + $0x4e0] sm:$0xf]  ;;  %v3123_v29 = vld [vmem:[#allocation2 + $0x4ec] sm:$0xf0]  ;;  %v2429_v44 = vor.u32 %v3063_v26, %v2428_v25  ;;  %1307 = vmatpush.bf16.msra.mxu1 %v2173_v39  ;;  %v3013_v26 = vld [vmem:[#allocation2 + $0x184] sm:$0xf] }
  0x2d   :  { %v2796_v30 = vld [vmem:[#allocation2 + $0x5e0] sm:$0xf]  ;;  %v3155_v31 = vld [vmem:[#allocation2 + $0x5ec] sm:$0xf0]  ;;  %v2669_v45 = vor.u32 %v3123_v29, %v2668_v27  ;;  %1321 = vmatpush.bf16.msra.mxu2 %v2301_v40  ;;  %v2238_v27 = vld [vmem:[#allocation2 + $0x190] sm:$0xf0]  ;;  %v2113_v29 = vor.u32 %v2981_v22, %v2110_v23 }
  0x2e   :  { %v2812_v37 = vld [vmem:[#allocation2 + $0x600] sm:$0xf]  ;;  %v3159_v38 = vld [vmem:[#allocation2 + $0x60c] sm:$0xf0]  ;;  %v2797_v49 = vor.u32 %v3155_v31, %v2796_v30  ;;  %1335 = vmatpush.bf16.msra.mxu3 %v2429_v44  ;;  %v2977_v34 = vld [vmem:[#allocation2 + $0x64] sm:$0xf] }
  0x2f   :  { %v2016_v42 = vld [vmem:[%s3400_s0] sm:$0xf]  ;;  %v3119_v52 = vld [vmem:[#allocation2 + $0x4cc] sm:$0xf0]  ;;  %v2813_v59 = vor.u32 %v3159_v38, %v2812_v37  ;;  %1342 = vmatpush.bf16.msrb.mxu0 %v2669_v45  ;;  %v2094_v35 = vld [vmem:[#allocation2 + $0x70] sm:$0xf0]  ;;  %v2241_v38 = vor.u32 %v3013_v26, %v2238_v27 }
  0x30   :  { %v2652_v51 = vld [vmem:[#allocation2 + $0x4c0] sm:$0xf]  ;;  %v3314_v55 = vor.u32 %v2961_v43, %v2016_v42  ;;  %v3151_v56 = vld [vmem:[#allocation2 + $0x5cc] sm:$0xf0]  ;;  %1356 = vmatpush.bf16.msrb.mxu1 %v2797_v49  ;;  %1322 = vmatmul.bf16.vlgmr.msra.gmra.mxu2 %v3312_v54  ;;  %v2040_v36 = vld [vmem:[%s3400_s0 + $0x18] sm:$0xf]  ;;  %v2097_v43 = vor.u32 %v2977_v34, %v2094_v35 }
  0x31   :  { %v2780_v53 = vld [vmem:[#allocation2 + $0x5c0] sm:$0xf]  ;;  %v2653_v0 = vor.u32 %v3119_v52, %v2652_v51  ;;  %v3115_v6 = vld [vmem:[#allocation2 + $0x4ac] sm:$0xf0]  ;;  %1377 = vmatpush.bf16.msrb.mxu2 %v2813_v59  ;;  %1336 = vmatmul.bf16.vlgmr.msra.gmra.mxu3 %v3316_v60  ;;  %v2964_v37 = vld [vmem:[%s3400_s0 + $0x30] sm:$0xf0] }
  0x32   :  { %v2018_v62 = vld [vmem:[%s3400_s0 + $0x1c] sm:$0xf0]  ;;  %1384 = vmatpush.bf16.msrb.mxu3 %v2161_v50  ;;  %v2781_v3 = vor.u32 %v3151_v56, %v2780_v53  ;;  %1294 = vmatmul.bf16.vlgmr.msra.gmra.mxu0 %v3314_v55  ;;  %v3147_v9 = vld [vmem:[#allocation2 + $0x5ac] sm:$0xf0]  ;;  %v3009_v40 = vld [vmem:[#allocation2 + $0x164] sm:$0xf]  ;;  %v3336_v50 = vor.u32 %v2964_v37, %v2040_v36 }
  0x33   :  { %v2636_v5 = vld [vmem:[#allocation2 + $0x4a0] sm:$0xf]  ;;  %v3326_v8 = vor.u32 %v2958_v61, %v2018_v62  ;;  %1343 = vmatpush.bf16.msrb.mxu0 %v2653_v0  ;;  %v3111_v19 = vld [vmem:[#allocation2 + $0x48c] sm:$0xf0]  ;;  %v2222_v41 = vld [vmem:[#allocation2 + $0x170] sm:$0xf0] }
  0x34   :  { %v2764_v7 = vld [vmem:[#allocation2 + $0x5a0] sm:$0xf]  ;;  %v2637_v13 = vor.u32 %v3115_v6, %v2636_v5  ;;  %1357 = vmatpush.bf16.msrb.mxu1 %v2781_v3  ;;  %v3143_v21 = vld [vmem:[#allocation2 + $0x58c] sm:$0xf0]  ;;  %v2973_v48 = vld [vmem:[#allocation2 + $0x44] sm:$0xf]  ;;  %v2225_v51 = vor.u32 %v3009_v40, %v2222_v41 }
  0x35   :  { %1398 = vmatpush.bf16.msra.mxu2 %v2289_v63  ;;  %v2765_v16 = vor.u32 %v3147_v9, %v2764_v7  ;;  %v2620_v18 = vld [vmem:[#allocation2 + $0x480] sm:$0xf]  ;;  %1308 = vmatmul.bf16.vlgmr.msra.gmra.mxu1 %v3326_v8  ;;  %v3107_v31 = vld [vmem:[#allocation2 + $0x46c] sm:$0xf0]  ;;  %v2078_v49 = vld [vmem:[#allocation2 + $0x50] sm:$0xf0] }
  0x36   :  { %1385 = vmatpush.bf16.msrb.mxu3 %v2145_v4  ;;  %v2748_v20 = vld [vmem:[#allocation2 + $0x580] sm:$0xf]  ;;  %v2621_v25 = vor.u32 %v3111_v19, %v2620_v18  ;;  %v3139_v33 = vld [vmem:[#allocation2 + $0x56c] sm:$0xf0]  ;;  %v3005_v53 = vld [vmem:[#allocation2 + $0x144] sm:$0xf]  ;;  %v2081_v58 = vor.u32 %v2973_v48, %v2078_v49 }
  0x37   :  { %1344 = vmatpush.bf16.msrb.mxu0 %v2637_v13  ;;  %v2749_v28 = vor.u32 %v3143_v21, %v2748_v20  ;;  %v2604_v30 = vld [vmem:[#allocation2 + $0x460] sm:$0xf]  ;;  %v3103_v45 = vld [vmem:[#allocation2 + $0x44c] sm:$0xf0]  ;;  %v2206_v56 = vld [vmem:[#allocation2 + $0x150] sm:$0xf0] }
  0x38   :  { %1358 = vmatpush.bf16.msrb.mxu1 %v2765_v16  ;;  %v2732_v32 = vld [vmem:[#allocation2 + $0x560] sm:$0xf]  ;;  %v2605_v39 = vor.u32 %v3107_v31, %v2604_v30  ;;  %v3135_v47 = vld [vmem:[#allocation2 + $0x54c] sm:$0xf0]  ;;  %v2969_v0 = vld [vmem:[#allocation2 + $0x24] sm:$0xf]  ;;  %v2209_v4 = vor.u32 %v3005_v53, %v2206_v56 }
  0x39   :  { %1399 = vmatpush.bf16.msra.mxu2 %v2273_v12  ;;  %v2733_v42 = vor.u32 %v3139_v33, %v2732_v32  ;;  %v2588_v44 = vld [vmem:[#allocation2 + $0x440] sm:$0xf]  ;;  %v3099_v61 = vld [vmem:[#allocation2 + $0x42c] sm:$0xf0]  ;;  %v2062_v1 = vld [vmem:[#allocation2 + $0x30] sm:$0xf0] }
  0x3a   :  { %1386 = vmatpush.bf16.msrb.mxu3 %v2129_v17  ;;  %v2716_v46 = vld [vmem:[#allocation2 + $0x540] sm:$0xf]  ;;  %v2589_v52 = vor.u32 %v3103_v45, %v2588_v44  ;;  %v3131_v63 = vld [vmem:[#allocation2 + $0x52c] sm:$0xf0]  ;;  %v3001_v2 = vld [vmem:[#allocation2 + $0x124] sm:$0xf]  ;;  %v2065_v11 = vor.u32 %v2969_v0, %v2062_v1 }
  0x3b   :  { %1345 = vmatpush.bf16.msrb.mxu0 %v2621_v25  ;;  %v2717_v57 = vor.u32 %v3135_v47, %v2716_v46  ;;  %v2572_v59 = vld [vmem:[#allocation2 + $0x420] sm:$0xf]  ;;  %v2190_v3 = vld [vmem:[#allocation2 + $0x130] sm:$0xf0]  ;;  %v3095_v7 = vld [vmem:[#allocation2 + $0x40c] sm:$0xf0] }
  0x3c   :  { %1359 = vmatpush.bf16.msrb.mxu1 %v2749_v28  ;;  %v2700_v62 = vld [vmem:[#allocation2 + $0x520] sm:$0xf]  ;;  %v2573_v5 = vor.u32 %v3099_v61, %v2572_v59  ;;  %v3127_v12 = vld [vmem:[#allocation2 + $0x50c] sm:$0xf0]  ;;  %v2965_v13 = vld [vmem:[#allocation2 + $0x4] sm:$0xf]  ;;  %v2193_v21 = vor.u32 %v3001_v2, %v2190_v3 }
  0x3d   :  { %1400 = vmatpush.bf16.msra.mxu2 %v2257_v24  ;;  %v2556_v6 = vld [vmem:[#allocation2 + $0x400] sm:$0xf]  ;;  %v2701_v10 = vor.u32 %v3131_v63, %v2700_v62  ;;  %v2046_v14 = vld [vmem:[#allocation2 + $0x10] sm:$0xf0]  ;;  %v3057_v15 = vld [vmem:[#allocation2 + $0x2e4] sm:$0xf] }
  0x3e   :  { %1387 = vmatpush.bf16.msrb.mxu3 %v2113_v29  ;;  %v2684_v9 = vld [vmem:[#allocation2 + $0x500] sm:$0xf]  ;;  %v2414_v16 = vld [vmem:[#allocation2 + $0x2f0] sm:$0xf0]  ;;  %v3089_v17 = vld [vmem:[#allocation2 + $0x3e4] sm:$0xf]  ;;  %v2557_v22 = vor.u32 %v3095_v7, %v2556_v6  ;;  %v2049_v27 = vor.u32 %v2965_v13, %v2046_v14 }
  0x3f   :  { %1346 = vmatpush.bf16.msrb.mxu0 %v2605_v39  ;;  %v2542_v18 = vld [vmem:[#allocation2 + $0x3f0] sm:$0xf0]  ;;  %v3121_v19 = vld [vmem:[#allocation2 + $0x4e4] sm:$0xf]  ;;  %v2032_v23 = vld [vmem:[%s3400_s0 + $0x10] sm:$0xf]  ;;  %v2685_v26 = vor.u32 %v3127_v12, %v2684_v9  ;;  %v2417_v31 = vor.u32 %v3057_v15, %v2414_v16 }
  0x40   :  { %1360 = vmatpush.bf16.msrb.mxu1 %v2733_v42  ;;  %2826 = vmatmul.msk.bf16.vlgmr.msrb.gmra.mxu2 %vm1282_vm0, %v3336_v50  ;;  %v2670_v20 = vld [vmem:[#allocation2 + $0x4f0] sm:$0xf0]  ;;  %v2963_v24 = vld [vmem:[%s3400_s0 + $0x28] sm:$0xf0]  ;;  %v2997_v25 = vld [vmem:[#allocation2 + $0x104] sm:$0xf]  ;;  %v2545_v32 = vor.u32 %v3089_v17, %v2542_v18 }
  0x41   :  { %1401 = vmatpush.bf16.msra.mxu2 %v2241_v38  ;;  %v2174_v28 = vld [vmem:[#allocation2 + $0x110] sm:$0xf0]  ;;  %v2034_v30 = vld [vmem:[%s3400_s0 + $0x2c] sm:$0xf0]  ;;  %v3153_v33 = vld [vmem:[#allocation2 + $0x5e4] sm:$0xf]  ;;  %v2673_v36 = vor.u32 %v3121_v19, %v2670_v20  ;;  %v3352_v37 = vor.u32 %v2963_v24, %v2032_v23 }
  0x42   :  { %1388 = vmatpush.bf16.msrb.mxu3 %v2097_v43  ;;  %v2960_v29 = vld [vmem:[%s3400_s0 + $0x14] sm:$0xf]  ;;  %v3053_v35 = vld [vmem:[#allocation2 + $0x2c4] sm:$0xf]  ;;  %v2177_v41 = vor.u32 %v2997_v25, %v2174_v28 }
  0x43   :  { %1347 = vmatpush.bf16.msrb.mxu0 %v2589_v52  ;;  %v2798_v34 = vld [vmem:[#allocation2 + $0x5f0] sm:$0xf0]  ;;  %v3085_v39 = vld [vmem:[#allocation2 + $0x3c4] sm:$0xf]  ;;  %v3354_v42 = vor.u32 %v2960_v29, %v2034_v30 }
  0x44   :  { %1361 = vmatpush.bf16.msrb.mxu1 %v2717_v57  ;;  %v2398_v38 = vld [vmem:[#allocation2 + $0x2d0] sm:$0xf0]  ;;  %v3117_v43 = vld [vmem:[#allocation2 + $0x4c4] sm:$0xf]  ;;  %v2801_v45 = vor.u32 %v3153_v33, %v2798_v34 }
  0x45   :  { %1402 = vmatpush.bf16.msra.mxu2 %v2225_v51  ;;  %v2526_v40 = vld [vmem:[#allocation2 + $0x3d0] sm:$0xf0]  ;;  %v2401_v46 = vor.u32 %v3053_v35, %v2398_v38  ;;  %v3149_v48 = vld [vmem:[#allocation2 + $0x5c4] sm:$0xf] }
  0x46   :  { %1389 = vmatpush.bf16.msrb.mxu3 %v2081_v58  ;;  %v2654_v44 = vld [vmem:[#allocation2 + $0x4d0] sm:$0xf0]  ;;  %v2529_v47 = vor.u32 %v3085_v39, %v2526_v40  ;;  %v3049_v51 = vld [vmem:[#allocation2 + $0x2a4] sm:$0xf] }
  0x47   :  { %1348 = vmatpush.bf16.msrb.mxu0 %v2573_v5  ;;  %v2782_v49 = vld [vmem:[#allocation2 + $0x5d0] sm:$0xf0]  ;;  %v2657_v52 = vor.u32 %v3117_v43, %v2654_v44  ;;  %v3081_v56 = vld [vmem:[#allocation2 + $0x3a4] sm:$0xf] }
  0x48   :  { %1362 = vmatpush.bf16.msrb.mxu1 %v2701_v10  ;;  %v2382_v53 = vld [vmem:[#allocation2 + $0x2b0] sm:$0xf0]  ;;  %v3113_v58 = vld [vmem:[#allocation2 + $0x4a4] sm:$0xf]  ;;  %v2785_v61 = vor.u32 %v3149_v48, %v2782_v49 }
  0x49   :  { %1403 = vmatpush.bf16.msra.mxu2 %v2209_v4  ;;  %v2510_v57 = vld [vmem:[#allocation2 + $0x3b0] sm:$0xf0]  ;;  %v2385_v62 = vor.u32 %v3049_v51, %v2382_v53  ;;  %v3145_v0 = vld [vmem:[#allocation2 + $0x5a4] sm:$0xf] }
  0x4a   :  { %1390 = vmatpush.bf16.msrb.mxu3 %v2065_v11  ;;  %v2638_v59 = vld [vmem:[#allocation2 + $0x4b0] sm:$0xf0]  ;;  %v2513_v63 = vor.u32 %v3081_v56, %v2510_v57  ;;  %v3045_v2 = vld [vmem:[#allocation2 + $0x284] sm:$0xf] }
  0x4b   :  { %1349 = vmatpush.bf16.msrb.mxu0 %v2557_v22  ;;  %v2766_v1 = vld [vmem:[#allocation2 + $0x5b0] sm:$0xf0]  ;;  %v2641_v3 = vor.u32 %v3113_v58, %v2638_v59  ;;  %v3077_v5 = vld [vmem:[#allocation2 + $0x384] sm:$0xf] }
  0x4c   :  { %1363 = vmatpush.bf16.msrb.mxu1 %v2685_v26  ;;  %v2366_v4 = vld [vmem:[#allocation2 + $0x290] sm:$0xf0]  ;;  %v3109_v7 = vld [vmem:[#allocation2 + $0x484] sm:$0xf]  ;;  %v2769_v10 = vor.u32 %v3145_v0, %v2766_v1  ;;  %v2164_v0 = vld [vmem:[#allocation2 + $0xe8] sm:$0xf] }
  0x4d   :  { %1404 = vmatpush.bf16.msra.mxu2 %v2193_v21  ;;  %v2494_v6 = vld [vmem:[#allocation2 + $0x390] sm:$0xf0]  ;;  %v2369_v11 = vor.u32 %v3045_v2, %v2366_v4  ;;  %v3141_v13 = vld [vmem:[#allocation2 + $0x584] sm:$0xf]  ;;  %v2996_v1 = vld [vmem:[#allocation2 + $0xf4] sm:$0xf0] }
  0x4e   :  { %1391 = vmatpush.bf16.msrb.mxu3 %v2049_v27  ;;  %1350 = vmatmul.bf16.vlgmr.msrb.gmra.mxu0 %v3352_v37  ;;  %v2622_v9 = vld [vmem:[#allocation2 + $0x490] sm:$0xf0]  ;;  %v2497_v12 = vor.u32 %v3077_v5, %v2494_v6  ;;  %v3041_v15 = vld [vmem:[#allocation2 + $0x264] sm:$0xf]  ;;  %v2420_v5 = vld [vmem:[#allocation2 + $0x2e8] sm:$0xf] }
  0x4f   :  { %1412 = vmatpush.bf16.msra.mxu0 %v2417_v31  ;;  %1364 = vmatmul.bf16.vlgmr.msrb.gmra.mxu1 %v3354_v42  ;;  %v2750_v14 = vld [vmem:[#allocation2 + $0x590] sm:$0xf0]  ;;  %v2625_v16 = vor.u32 %v3109_v7, %v2622_v9  ;;  %v3073_v18 = vld [vmem:[#allocation2 + $0x364] sm:$0xf]  ;;  %v3060_v6 = vld [vmem:[#allocation2 + $0x2f4] sm:$0xf0] }
  0x50   :  { %1426 = vmatpush.bf16.msra.mxu1 %v2545_v32  ;;  %v2350_v17 = vld [vmem:[#allocation2 + $0x270] sm:$0xf0]  ;;  %v3105_v20 = vld [vmem:[#allocation2 + $0x464] sm:$0xf]  ;;  %v2753_v22 = vor.u32 %v3141_v13, %v2750_v14  ;;  %v2165_v13 = vor.u32 %v2996_v1, %v2164_v0  ;;  %v2548_v14 = vld [vmem:[#allocation2 + $0x3e8] sm:$0xf] }
  0x51   :  { %1405 = vmatpush.bf16.msra.mxu2 %v2177_v41  ;;  %1392 = vmatmul.bf16.vlgmr.msrb.gmra.mxu3 %v3314_v55  ;;  %v2478_v19 = vld [vmem:[#allocation2 + $0x370] sm:$0xf0]  ;;  %v2353_v23 = vor.u32 %v3041_v15, %v2350_v17  ;;  %v3137_v25 = vld [vmem:[#allocation2 + $0x564] sm:$0xf]  ;;  %v3092_v15 = vld [vmem:[#allocation2 + $0x3f4] sm:$0xf0] }
  0x52   :  { %1440 = vmatpush.bf16.msra.mxu3 %v2673_v36  ;;  %v2606_v21 = vld [vmem:[#allocation2 + $0x470] sm:$0xf0]  ;;  %v2481_v24 = vor.u32 %v3073_v18, %v2478_v19  ;;  %v3037_v27 = vld [vmem:[#allocation2 + $0x244] sm:$0xf]  ;;  %v2292_v17 = vld [vmem:[#allocation2 + $0x1e8] sm:$0xf]  ;;  %v2421_v19 = vor.u32 %v3060_v6, %v2420_v5 }
  0x53   :  { %1413 = vmatpush.bf16.msra.mxu0 %v2401_v46  ;;  %v2734_v26 = vld [vmem:[#allocation2 + $0x570] sm:$0xf0]  ;;  %v2609_v28 = vor.u32 %v3105_v20, %v2606_v21  ;;  %v3069_v30 = vld [vmem:[#allocation2 + $0x344] sm:$0xf]  ;;  %v3028_v18 = vld [vmem:[#allocation2 + $0x1f4] sm:$0xf0] }
  0x54   :  { %1427 = vmatpush.bf16.msra.mxu1 %v2529_v47  ;;  %1406 = vmatmul.bf16.vlgmr.msra.gmra.mxu2 %v3326_v8  ;;  %v2334_v29 = vld [vmem:[#allocation2 + $0x250] sm:$0xf0]  ;;  %v3101_v32 = vld [vmem:[#allocation2 + $0x444] sm:$0xf]  ;;  %v2737_v34 = vor.u32 %v3137_v25, %v2734_v26  ;;  %v2148_v21 = vld [vmem:[#allocation2 + $0xc8] sm:$0xf]  ;;  %v2293_v26 = vor.u32 %v3028_v18, %v2292_v17 }
  0x55   :  { %1454 = vmatpush.bf16.msrb.mxu2 %v2801_v45  ;;  %v2462_v31 = vld [vmem:[#allocation2 + $0x350] sm:$0xf0]  ;;  %v2337_v35 = vor.u32 %v3037_v27, %v2334_v29  ;;  %v3133_v38 = vld [vmem:[#allocation2 + $0x544] sm:$0xf]  ;;  %v3056_v25 = vld [vmem:[#allocation2 + $0x2d4] sm:$0xf0] }
  0x56   :  { %1441 = vmatpush.bf16.msra.mxu3 %v2657_v52  ;;  %v2590_v33 = vld [vmem:[#allocation2 + $0x450] sm:$0xf0]  ;;  %v2465_v36 = vor.u32 %v3069_v30, %v2462_v31  ;;  %v3033_v40 = vld [vmem:[#allocation2 + $0x224] sm:$0xf]  ;;  %v2532_v27 = vld [vmem:[#allocation2 + $0x3c8] sm:$0xf] }
  0x57   :  { %1414 = vmatpush.bf16.msra.mxu0 %v2385_v62  ;;  %v2718_v39 = vld [vmem:[#allocation2 + $0x550] sm:$0xf0]  ;;  %v2593_v41 = vor.u32 %v3101_v32, %v2590_v33  ;;  %v3065_v44 = vld [vmem:[#allocation2 + $0x324] sm:$0xf]  ;;  %v2276_v30 = vld [vmem:[#allocation2 + $0x1c8] sm:$0xf] }
  0x58   :  { %1428 = vmatpush.bf16.msra.mxu1 %v2513_v63  ;;  %v2318_v43 = vld [vmem:[#allocation2 + $0x230] sm:$0xf0]  ;;  %v3097_v46 = vld [vmem:[#allocation2 + $0x424] sm:$0xf]  ;;  %v2721_v48 = vor.u32 %v3133_v38, %v2718_v39  ;;  %v3024_v31 = vld [vmem:[#allocation2 + $0x1d4] sm:$0xf0] }
  0x59   :  { %1455 = vmatpush.bf16.msrb.mxu2 %v2785_v61  ;;  %v2446_v45 = vld [vmem:[#allocation2 + $0x330] sm:$0xf0]  ;;  %v3129_v49 = vld [vmem:[#allocation2 + $0x524] sm:$0xf]  ;;  %v2321_v52 = vor.u32 %v3033_v40, %v2318_v43  ;;  %v2132_v33 = vld [vmem:[#allocation2 + $0xa8] sm:$0xf]  ;;  %v2277_v39 = vor.u32 %v3024_v31, %v2276_v30 }
  0x5a   :  { %1442 = vmatpush.bf16.msra.mxu3 %v2641_v3  ;;  %v2574_v47 = vld [vmem:[#allocation2 + $0x430] sm:$0xf0]  ;;  %v2449_v53 = vor.u32 %v3065_v44, %v2446_v45  ;;  %v3029_v56 = vld [vmem:[#allocation2 + $0x204] sm:$0xf]  ;;  %v3052_v38 = vld [vmem:[#allocation2 + $0x2b4] sm:$0xf0] }
  0x5b   :  { %1415 = vmatpush.bf16.msra.mxu0 %v2369_v11  ;;  %v2702_v51 = vld [vmem:[#allocation2 + $0x530] sm:$0xf0]  ;;  %v3061_v58 = vld [vmem:[#allocation2 + $0x304] sm:$0xf]  ;;  %v2577_v59 = vor.u32 %v3097_v46, %v2574_v47  ;;  %v2516_v40 = vld [vmem:[#allocation2 + $0x3a8] sm:$0xf] }
  0x5c   :  { %1429 = vmatpush.bf16.msra.mxu1 %v2497_v12  ;;  %v2302_v57 = vld [vmem:[#allocation2 + $0x210] sm:$0xf0]  ;;  %v3093_v62 = vld [vmem:[#allocation2 + $0x404] sm:$0xf]  ;;  %v2705_v3 = vor.u32 %v3129_v49, %v2702_v51  ;;  %v2260_v44 = vld [vmem:[#allocation2 + $0x1a8] sm:$0xf] }
  0x5d   :  { %1456 = vmatpush.bf16.msrb.mxu2 %v2769_v10  ;;  %v2430_v61 = vld [vmem:[#allocation2 + $0x310] sm:$0xf0]  ;;  %v3157_v2 = vld [vmem:[#allocation2 + $0x604] sm:$0xf]  ;;  %v2305_v7 = vor.u32 %v3029_v56, %v2302_v57  ;;  %v3020_v45 = vld [vmem:[#allocation2 + $0x1b4] sm:$0xf0] }
  0x5e   :  { %1443 = vmatpush.bf16.msra.mxu3 %v2625_v16  ;;  %v2558_v63 = vld [vmem:[#allocation2 + $0x410] sm:$0xf0]  ;;  %v2433_v9 = vor.u32 %v3061_v58, %v2430_v61  ;;  %v3125_v10 = vld [vmem:[#allocation2 + $0x504] sm:$0xf]  ;;  %v2116_v47 = vld [vmem:[#allocation2 + $0x88] sm:$0xf] }
  0x5f   :  { %1416 = vmatpush.bf16.msra.mxu0 %v2353_v23  ;;  %v2814_v4 = vld [vmem:[#allocation2 + $0x610] sm:$0xf0]  ;;  %v2561_v12 = vor.u32 %v3093_v62, %v2558_v63  ;;  %v2549_v23 = vor.u32 %v3092_v15, %v2548_v14  ;;  %v2372_v51 = vld [vmem:[#allocation2 + $0x288] sm:$0xf]  ;;  %v3080_v57 = vld [vmem:[#allocation2 + $0x394] sm:$0xf0] }
  0x60   :  { %1430 = vmatpush.bf16.msra.mxu1 %v2481_v24  ;;  %v2686_v11 = vld [vmem:[#allocation2 + $0x510] sm:$0xf0]  ;;  %v2817_v16 = vor.u32 %v3157_v2, %v2814_v4  ;;  %v2404_v24 = vld [vmem:[#allocation2 + $0x2c8] sm:$0xf]  ;;  %v3016_v61 = vld [vmem:[#allocation2 + $0x194] sm:$0xf0] }
  0x61   :  { %1457 = vmatpush.bf16.msrb.mxu2 %v2753_v22  ;;  %v2689_v20 = vor.u32 %v3125_v10, %v2686_v11  ;;  %v2992_v22 = vld [vmem:[#allocation2 + $0xd4] sm:$0xf0]  ;;  %v2405_v32 = vor.u32 %v3056_v25, %v2404_v24  ;;  %v2500_v56 = vld [vmem:[#allocation2 + $0x388] sm:$0xf] }
  0x62   :  { %1444 = vmatpush.bf16.msra.mxu3 %v2609_v28  ;;  %v3088_v28 = vld [vmem:[#allocation2 + $0x3d4] sm:$0xf0]  ;;  %v2149_v29 = vor.u32 %v2992_v22, %v2148_v21  ;;  %v2100_v63 = vld [vmem:[#allocation2 + $0x68] sm:$0xf]  ;;  %v2501_v1 = vor.u32 %v3080_v57, %v2500_v56  ;;  %v2994_v56 = vld [vmem:[#allocation2 + $0xec] sm:$0xf] }
  0x63   :  { %1417 = vmatpush.bf16.msra.mxu0 %v2337_v35  ;;  %v2533_v35 = vor.u32 %v3088_v28, %v2532_v27  ;;  %v2980_v0 = vld [vmem:[#allocation2 + $0x74] sm:$0xf0]  ;;  %v2356_v2 = vld [vmem:[#allocation2 + $0x268] sm:$0xf]  ;;  %v2166_v57 = vld [vmem:[#allocation2 + $0xf8] sm:$0xf0] }
  0x64   :  { %1431 = vmatpush.bf16.msra.mxu1 %v2465_v36  ;;  %v2388_v36 = vld [vmem:[#allocation2 + $0x2a8] sm:$0xf]  ;;  %v3076_v6 = vld [vmem:[#allocation2 + $0x374] sm:$0xf0] }
  0x65   :  { %1458 = vmatpush.bf16.msrb.mxu2 %v2737_v34  ;;  %v2988_v34 = vld [vmem:[#allocation2 + $0xb4] sm:$0xf0]  ;;  %v2389_v46 = vor.u32 %v3052_v38, %v2388_v36  ;;  %v2484_v5 = vld [vmem:[#allocation2 + $0x368] sm:$0xf] }
  0x66   :  { %1445 = vmatpush.bf16.msra.mxu3 %v2593_v41  ;;  %v3084_v41 = vld [vmem:[#allocation2 + $0x3b4] sm:$0xf0]  ;;  %v2133_v43 = vor.u32 %v2988_v34, %v2132_v33  ;;  %v2485_v14 = vor.u32 %v3076_v6, %v2484_v5  ;;  %v2340_v15 = vld [vmem:[#allocation2 + $0x248] sm:$0xf]  ;;  %v2169_v6 = vor.u32 %v2994_v56, %v2166_v57 }
  0x67   :  { %1418 = vmatpush.bf16.msra.mxu0 %v2321_v52  ;;  %v2517_v49 = vor.u32 %v3084_v41, %v2516_v40  ;;  %v3048_v52 = vld [vmem:[#allocation2 + $0x294] sm:$0xf0]  ;;  %v2468_v18 = vld [vmem:[#allocation2 + $0x348] sm:$0xf] }
  0x68   :  { %1432 = vmatpush.bf16.msra.mxu1 %v2449_v53  ;;  %v2261_v53 = vor.u32 %v3020_v45, %v2260_v44  ;;  %v2373_v62 = vor.u32 %v3048_v52, %v2372_v51  ;;  %v3012_v10 = vld [vmem:[#allocation2 + $0x174] sm:$0xf0]  ;;  %v2212_v21 = vld [vmem:[#allocation2 + $0x148] sm:$0xf] }
  0x69   :  { %1459 = vmatpush.bf16.msrb.mxu2 %v2721_v48  ;;  %v2984_v48 = vld [vmem:[#allocation2 + $0x94] sm:$0xf0]  ;;  %v2068_v24 = vld [vmem:[#allocation2 + $0x28] sm:$0xf] }
  0x6a   :  { %1446 = vmatpush.bf16.msra.mxu3 %v2577_v59  ;;  %v2117_v58 = vor.u32 %v2984_v48, %v2116_v47  ;;  %v2244_v59 = vld [vmem:[#allocation2 + $0x188] sm:$0xf]  ;;  %v3008_v22 = vld [vmem:[#allocation2 + $0x154] sm:$0xf0] }
  0x6b   :  { %1419 = vmatpush.bf16.msra.mxu0 %v2305_v7  ;;  %v2245_v4 = vor.u32 %v3016_v61, %v2244_v59  ;;  %v2101_v7 = vor.u32 %v2980_v0, %v2100_v63  ;;  %v2972_v25 = vld [vmem:[#allocation2 + $0x34] sm:$0xf0]  ;;  %v2324_v27 = vld [vmem:[#allocation2 + $0x228] sm:$0xf] }
  0x6c   :  { %1433 = vmatpush.bf16.msra.mxu1 %v2433_v9  ;;  %v2228_v9 = vld [vmem:[#allocation2 + $0x168] sm:$0xf]  ;;  %v3036_v28 = vld [vmem:[#allocation2 + $0x234] sm:$0xf0] }
  0x6d   :  { %1460 = vmatpush.bf16.msrb.mxu2 %v2705_v3  ;;  %v3044_v3 = vld [vmem:[#allocation2 + $0x274] sm:$0xf0]  ;;  %v2229_v17 = vor.u32 %v3012_v10, %v2228_v9  ;;  %v2452_v30 = vld [vmem:[#allocation2 + $0x328] sm:$0xf]  ;;  %v2325_v36 = vor.u32 %v3036_v28, %v2324_v27  ;;  %v2990_v9 = vld [vmem:[#allocation2 + $0xcc] sm:$0xf] }
  0x6e   :  { %1447 = vmatpush.bf16.msra.mxu3 %v2561_v12  ;;  %1420 = vmatmul.bf16.vlgmr.msra.gmra.mxu0 %v3312_v54  ;;  %v2357_v11 = vor.u32 %v3044_v3, %v2356_v2  ;;  %v2084_v12 = vld [vmem:[#allocation2 + $0x48] sm:$0xf]  ;;  %v3068_v31 = vld [vmem:[#allocation2 + $0x334] sm:$0xf0]  ;;  %v3026_v3 = vld [vmem:[#allocation2 + $0x1ec] sm:$0xf] }
  0x6f   :  { %1510 = vmatpush.bf16.msrb.mxu0 %v2421_v19  ;;  %1434 = vmatmul.bf16.vlgmr.msra.gmra.mxu1 %v3316_v60  ;;  %v3072_v19 = vld [vmem:[#allocation2 + $0x354] sm:$0xf0]  ;;  %v2196_v33 = vld [vmem:[#allocation2 + $0x128] sm:$0xf]  ;;  %v2453_v41 = vor.u32 %v3068_v31, %v2452_v30  ;;  %v2150_v10 = vld [vmem:[#allocation2 + $0xd8] sm:$0xf0] }
  0x70   :  { %1482 = vmatpush.bf16.msrb.mxu1 %v2165_v13  ;;  %v2976_v13 = vld [vmem:[#allocation2 + $0x54] sm:$0xf0]  ;;  %v2308_v44 = vld [vmem:[#allocation2 + $0x208] sm:$0xf]  ;;  %v2262_v30 = vld [vmem:[#allocation2 + $0x1b8] sm:$0xf0] }
  0x71   :  { %1461 = vmatpush.bf16.msrb.mxu2 %v2689_v20  ;;  %1448 = vmatmul.bf16.vlgmr.msra.gmra.mxu3 %v3352_v37  ;;  %v2085_v20 = vor.u32 %v2976_v13, %v2084_v12  ;;  %v3004_v34 = vld [vmem:[#allocation2 + $0x134] sm:$0xf0]  ;;  %v2804_v61 = vld [vmem:[#allocation2 + $0x5e8] sm:$0xf] }
  0x72   :  { %1475 = vmatpush.bf16.msrb.mxu3 %v2817_v16  ;;  %v3040_v16 = vld [vmem:[#allocation2 + $0x254] sm:$0xf0]  ;;  %v2197_v47 = vor.u32 %v3004_v34, %v2196_v33  ;;  %v2660_v63 = vld [vmem:[#allocation2 + $0x4c8] sm:$0xf]  ;;  %v2982_v33 = vld [vmem:[#allocation2 + $0x8c] sm:$0xf] }
  0x73   :  { %1511 = vmatpush.bf16.msrb.mxu0 %v2405_v32  ;;  %v2069_v32 = vor.u32 %v2972_v25, %v2068_v24  ;;  %v2968_v38 = vld [vmem:[#allocation2 + $0x14] sm:$0xf0]  ;;  %v2788_v13 = vld [vmem:[#allocation2 + $0x5c8] sm:$0xf]  ;;  %v2118_v34 = vld [vmem:[#allocation2 + $0x98] sm:$0xf0] }
  0x74   :  { %1483 = vmatpush.bf16.msrb.mxu1 %v2149_v29  ;;  %1462 = vmatmul.bf16.vlgmr.msrb.gmra.mxu2 %v3354_v42  ;;  %v2213_v29 = vor.u32 %v3008_v22, %v2212_v21  ;;  %v3124_v40 = vld [vmem:[#allocation2 + $0x4f4] sm:$0xf0]  ;;  %v2986_v21 = vld [vmem:[#allocation2 + $0xac] sm:$0xf]  ;;  %v2134_v22 = vld [vmem:[#allocation2 + $0xb8] sm:$0xf0] }
  0x75   :  { %1524 = vmatpush.bf16.msra.mxu2 %v2549_v23  ;;  %v2341_v23 = vor.u32 %v3040_v16, %v2340_v15  ;;  %v3032_v45 = vld [vmem:[#allocation2 + $0x214] sm:$0xf0]  ;;  %v2644_v15 = vld [vmem:[#allocation2 + $0x4a8] sm:$0xf]  ;;  %v2137_v31 = vor.u32 %v2986_v21, %v2134_v22  ;;  %v2198_v21 = vld [vmem:[#allocation2 + $0x138] sm:$0xf0] }
  0x76   :  { %1496 = vmatpush.bf16.msra.mxu3 %v2293_v26  ;;  %v2469_v26 = vor.u32 %v3072_v19, %v2468_v18  ;;  %v3064_v48 = vld [vmem:[#allocation2 + $0x314] sm:$0xf0]  ;;  %v2309_v59 = vor.u32 %v3032_v45, %v2308_v44  ;;  %v2278_v18 = vld [vmem:[#allocation2 + $0x1d8] sm:$0xf0]  ;;  %v2153_v19 = vor.u32 %v2990_v9, %v2150_v10  ;;  %v2772_v25 = vld [vmem:[#allocation2 + $0x5a8] sm:$0xf]  ;;  %v2121_v45 = vor.u32 %v2982_v33, %v2118_v34 }
  0x77   :  { %1512 = vmatpush.bf16.msrb.mxu0 %v2389_v46  ;;  %v2436_v46 = vld [vmem:[#allocation2 + $0x308] sm:$0xf]  ;;  %v3160_v51 = vld [vmem:[#allocation2 + $0x614] sm:$0xf0]  ;;  %v2246_v44 = vld [vmem:[#allocation2 + $0x198] sm:$0xf0] }
  0x78   :  { %1484 = vmatpush.bf16.msrb.mxu1 %v2133_v43  ;;  %v2180_v43 = vld [vmem:[#allocation2 + $0x108] sm:$0xf]  ;;  %v2437_v0 = vor.u32 %v3064_v48, %v2436_v46  ;;  %v3116_v16 = vld [vmem:[#allocation2 + $0x4b4] sm:$0xf0]  ;;  %v2102_v48 = vld [vmem:[#allocation2 + $0x78] sm:$0xf0] }
  0x79   :  { %1525 = vmatpush.bf16.msra.mxu2 %v2533_v35  ;;  %v2052_v35 = vld [vmem:[#allocation2 + $0x8] sm:$0xf]  ;;  %v3112_v28 = vld [vmem:[#allocation2 + $0x494] sm:$0xf0]  ;;  %v2214_v9 = vld [vmem:[#allocation2 + $0x158] sm:$0xf0] }
  0x7a   :  { %1497 = vmatpush.bf16.msra.mxu3 %v2277_v39  ;;  %v2676_v39 = vld [vmem:[#allocation2 + $0x4e8] sm:$0xf]  ;;  %v2053_v52 = vor.u32 %v2968_v38, %v2052_v35  ;;  %v3104_v57 = vld [vmem:[#allocation2 + $0x454] sm:$0xf0]  ;;  %v2550_v33 = vld [vmem:[#allocation2 + $0x3f8] sm:$0xf0] }
  0x7b   :  { %1513 = vmatpush.bf16.msrb.mxu0 %v2373_v62  ;;  %v3156_v62 = vld [vmem:[#allocation2 + $0x5f4] sm:$0xf0]  ;;  %v2628_v27 = vld [vmem:[#allocation2 + $0x488] sm:$0xf] }
  0x7c   :  { %1485 = vmatpush.bf16.msrb.mxu1 %v2117_v58  ;;  %v2677_v58 = vor.u32 %v3124_v40, %v2676_v39  ;;  %v2629_v35 = vor.u32 %v3112_v28, %v2628_v27  ;;  %v2756_v38 = vld [vmem:[#allocation2 + $0x588] sm:$0xf]  ;;  %v3144_v39 = vld [vmem:[#allocation2 + $0x594] sm:$0xf0]  ;;  %v2966_v27 = vld [vmem:[#allocation2 + $0xc] sm:$0xf] }
  0x7d   :  { %1526 = vmatpush.bf16.msra.mxu2 %v2517_v49  ;;  %v2820_v49 = vld [vmem:[#allocation2 + $0x608] sm:$0xf]  ;;  %v2757_v46 = vor.u32 %v3144_v39, %v2756_v38  ;;  %v2054_v28 = vld [vmem:[#allocation2 + $0x18] sm:$0xf0]  ;;  %v3054_v38 = vld [vmem:[#allocation2 + $0x2cc] sm:$0xf] }
  0x7e   :  { %1498 = vmatpush.bf16.msra.mxu3 %v2261_v53  ;;  %v3000_v53 = vld [vmem:[#allocation2 + $0x114] sm:$0xf0]  ;;  %v2821_v2 = vor.u32 %v3160_v51, %v2820_v49  ;;  %v2612_v40 = vld [vmem:[#allocation2 + $0x468] sm:$0xf]  ;;  %v2057_v39 = vor.u32 %v2966_v27, %v2054_v28  ;;  %v2486_v28 = vld [vmem:[#allocation2 + $0x378] sm:$0xf0] }
  0x7f   :  { %1514 = vmatpush.bf16.msrb.mxu0 %v2357_v11  ;;  %v2181_v5 = vor.u32 %v3000_v53, %v2180_v43  ;;  %v3014_v43 = vld [vmem:[#allocation2 + $0x18c] sm:$0xf]  ;;  %v3140_v53 = vld [vmem:[#allocation2 + $0x574] sm:$0xf0]  ;;  %v2596_v56 = vld [vmem:[#allocation2 + $0x448] sm:$0xf] }
  0x80   :  { %1486 = vmatpush.bf16.msrb.mxu1 %v2101_v7  ;;  %v2805_v7 = vor.u32 %v3156_v62, %v2804_v61  ;;  %v2249_v51 = vor.u32 %v3014_v43, %v2246_v44  ;;  %v2182_v43 = vld [vmem:[#allocation2 + $0x118] sm:$0xf0] }
  0x81   :  { %1527 = vmatpush.bf16.msra.mxu2 %v2501_v1  ;;  %2827 = vmatmul.msk.bf16.vlgmr.msrb.gmra.mxu3 %vm1282_vm0, %v3336_v50  ;;  %v3120_v1 = vld [vmem:[#allocation2 + $0x4d4] sm:$0xf0] }
  0x82   :  { %1499 = vmatpush.bf16.msra.mxu3 %v2245_v4  ;;  %v2294_v4 = vld [vmem:[#allocation2 + $0x1f8] sm:$0xf0]  ;;  %v2661_v11 = vor.u32 %v3120_v1, %v2660_v63  ;;  %v2974_v63 = vld [vmem:[#allocation2 + $0x4c] sm:$0xf]  ;;  %v2597_v1 = vor.u32 %v3104_v57, %v2596_v56 }
  0x83   :  { %1515 = vmatpush.bf16.msrb.mxu0 %v2341_v23  ;;  %v2297_v12 = vor.u32 %v3026_v3, %v2294_v4  ;;  %v2645_v23 = vor.u32 %v3116_v16, %v2644_v15  ;;  %v2724_v3 = vld [vmem:[#allocation2 + $0x548] sm:$0xf]  ;;  %v3136_v4 = vld [vmem:[#allocation2 + $0x554] sm:$0xf0]  ;;  %v3118_v56 = vld [vmem:[#allocation2 + $0x4cc] sm:$0xf] }
  0x84   :  { %1487 = vmatpush.bf16.msrb.mxu1 %v2085_v20  ;;  %v2708_v16 = vld [vmem:[#allocation2 + $0x528] sm:$0xf]  ;;  %v2662_v57 = vld [vmem:[#allocation2 + $0x4d8] sm:$0xf0] }
  0x85   :  { %1528 = vmatpush.bf16.msra.mxu2 %v2485_v14  ;;  %v3152_v14 = vld [vmem:[#allocation2 + $0x5d4] sm:$0xf0] }
  0x86   :  { %1500 = vmatpush.bf16.msra.mxu3 %v2229_v17  ;;  %v3022_v17 = vld [vmem:[#allocation2 + $0x1cc] sm:$0xf]  ;;  %v2789_v20 = vor.u32 %v3152_v14, %v2788_v13  ;;  %v2070_v13 = vld [vmem:[#allocation2 + $0x38] sm:$0xf0] }
  0x87   :  { %1516 = vmatpush.bf16.msrb.mxu0 %v2325_v36  ;;  %v2281_v24 = vor.u32 %v3022_v17, %v2278_v18  ;;  %v3132_v17 = vld [vmem:[#allocation2 + $0x534] sm:$0xf0]  ;;  %v2564_v18 = vld [vmem:[#allocation2 + $0x408] sm:$0xf] }
  0x88   :  { %1488 = vmatpush.bf16.msrb.mxu1 %v2069_v32 }
  0x89   :  { %1529 = vmatpush.bf16.msra.mxu2 %v2469_v26  ;;  %v3148_v26 = vld [vmem:[#allocation2 + $0x5b4] sm:$0xf0] }
  0x8a   :  { %1501 = vmatpush.bf16.msra.mxu3 %v2213_v29  ;;  %v3018_v29 = vld [vmem:[#allocation2 + $0x1ac] sm:$0xf]  ;;  %v2773_v32 = vor.u32 %v3148_v26, %v2772_v25  ;;  %v2709_v25 = vor.u32 %v3132_v17, %v2708_v16  ;;  %v2692_v26 = vld [vmem:[#allocation2 + $0x508] sm:$0xf]  ;;  %v2502_v17 = vld [vmem:[#allocation2 + $0x398] sm:$0xf0] }
  0x8b   :  { %1517 = vmatpush.bf16.msrb.mxu0 %v2309_v59  ;;  %v2265_v36 = vor.u32 %v3018_v29, %v2262_v30  ;;  %v2230_v59 = vld [vmem:[#allocation2 + $0x178] sm:$0xf0] }
  0x8c   :  { %1489 = vmatpush.bf16.msrb.mxu1 %v2053_v52  ;;  %v2740_v52 = vld [vmem:[#allocation2 + $0x568] sm:$0xf] }
  0x8d   :  { %1530 = vmatpush.bf16.msra.mxu2 %v2453_v41  ;;  %v3108_v41 = vld [vmem:[#allocation2 + $0x474] sm:$0xf0]  ;;  %v2741_v62 = vor.u32 %v3140_v53, %v2740_v52  ;;  %v2534_v53 = vld [vmem:[#allocation2 + $0x3d8] sm:$0xf0] }
  0x8e   :  { %1502 = vmatpush.bf16.msra.mxu3 %v2197_v47  ;;  %1518 = vmatmul.bf16.vlgmr.msrb.gmra.mxu0 %v3312_v54  ;;  %v2978_v47 = vld [vmem:[#allocation2 + $0x6c] sm:$0xf]  ;;  %v2613_v49 = vor.u32 %v3108_v41, %v2612_v40  ;;  %v2406_v40 = vld [vmem:[#allocation2 + $0x2d8] sm:$0xf0] }
  0x8f   :  { %1573 = vmatpush.bf16.msra.mxu0 %v2821_v2  ;;  %1490 = vmatmul.bf16.vlgmr.msrb.gmra.mxu1 %v3314_v55  ;;  %v2105_v61 = vor.u32 %v2978_v47, %v2102_v48  ;;  %v2998_v41 = vld [vmem:[#allocation2 + $0x10c] sm:$0xf] }
  0x90   :  { %1538 = vmatpush.bf16.msra.mxu1 %v2677_v58  ;;  %v3010_v58 = vld [vmem:[#allocation2 + $0x16c] sm:$0xf]  ;;  %v2185_v52 = vor.u32 %v2998_v41, %v2182_v43  ;;  %v2598_v43 = vld [vmem:[#allocation2 + $0x458] sm:$0xf0] }
  0x91   :  { %1531 = vmatpush.bf16.msra.mxu2 %v2437_v0  ;;  %v2086_v0 = vld [vmem:[#allocation2 + $0x58] sm:$0xf0]  ;;  %v2233_v2 = vor.u32 %v3010_v58, %v2230_v59  ;;  %v3050_v59 = vld [vmem:[#allocation2 + $0x2ac] sm:$0xf] }
  0x92   :  { %1503 = vmatpush.bf16.msra.mxu3 %v2181_v5  ;;  %v2580_v5 = vld [vmem:[#allocation2 + $0x428] sm:$0xf]  ;;  %v2089_v10 = vor.u32 %v2974_v63, %v2086_v0  ;;  %v2790_v63 = vld [vmem:[#allocation2 + $0x5d8] sm:$0xf0]  ;;  %v3102_v41 = vld [vmem:[#allocation2 + $0x44c] sm:$0xf] }
  0x93   :  { %1594 = vmatpush.bf16.msrb.mxu0 %v2297_v12  ;;  %v2970_v12 = vld [vmem:[#allocation2 + $0x2c] sm:$0xf] }
  0x94   :  { %1539 = vmatpush.bf16.msra.mxu1 %v2661_v11  ;;  %1532 = vmatmul.bf16.vlgmr.msra.gmra.mxu2 %v3316_v60  ;;  %v2725_v11 = vor.u32 %v3136_v4, %v2724_v3  ;;  %v2073_v22 = vor.u32 %v2970_v12, %v2070_v13  ;;  %v2518_v4 = vld [vmem:[#allocation2 + $0x3b8] sm:$0xf0] }
  0x95   :  { %1580 = vmatpush.bf16.msrb.mxu2 %v2169_v6  ;;  %1504 = vmatmul.bf16.vlgmr.msra.gmra.mxu3 %v3326_v8  ;;  %v3100_v6 = vld [vmem:[#allocation2 + $0x434] sm:$0xf0]  ;;  %v2774_v12 = vld [vmem:[#allocation2 + $0x5b8] sm:$0xf0] }
  0x96   :  { %1552 = vmatpush.bf16.msrb.mxu3 %v2805_v7  ;;  %v3006_v7 = vld [vmem:[#allocation2 + $0x14c] sm:$0xf]  ;;  %v2581_v14 = vor.u32 %v3100_v6, %v2580_v5  ;;  %v2646_v6 = vld [vmem:[#allocation2 + $0x4b8] sm:$0xf0] }
  0x97   :  { %1595 = vmatpush.bf16.msrb.mxu0 %v2281_v24  ;;  %v2217_v15 = vor.u32 %v3006_v7, %v2214_v9  ;;  %v2422_v24 = vld [vmem:[#allocation2 + $0x2f8] sm:$0xf0]  ;;  %v3114_v5 = vld [vmem:[#allocation2 + $0x4ac] sm:$0xf] }
  0x98   :  { %1540 = vmatpush.bf16.msra.mxu1 %v2645_v23  ;;  %v3058_v23 = vld [vmem:[#allocation2 + $0x2ec] sm:$0xf] }
  0x99   :  { %1581 = vmatpush.bf16.msrb.mxu2 %v2153_v19  ;;  %v3096_v19 = vld [vmem:[#allocation2 + $0x414] sm:$0xf0]  ;;  %v2425_v34 = vor.u32 %v3058_v23, %v2422_v24  ;;  %v3046_v9 = vld [vmem:[#allocation2 + $0x28c] sm:$0xf] }
  0x9a   :  { %1553 = vmatpush.bf16.msrb.mxu3 %v2789_v20  ;;  %v3002_v20 = vld [vmem:[#allocation2 + $0x12c] sm:$0xf]  ;;  %v2565_v29 = vor.u32 %v3096_v19, %v2564_v18  ;;  %v2630_v19 = vld [vmem:[#allocation2 + $0x498] sm:$0xf0] }
  0x9b   :  { %1596 = vmatpush.bf16.msrb.mxu0 %v2265_v36  ;;  %v2201_v30 = vor.u32 %v3002_v20, %v2198_v21  ;;  %v2678_v36 = vld [vmem:[#allocation2 + $0x4f8] sm:$0xf0]  ;;  %v3110_v18 = vld [vmem:[#allocation2 + $0x48c] sm:$0xf] }
  0x9c   :  { %1541 = vmatpush.bf16.msra.mxu1 %v2629_v35  ;;  %v3122_v35 = vld [vmem:[#allocation2 + $0x4ec] sm:$0xf] }
  0x9d   :  { %1582 = vmatpush.bf16.msrb.mxu2 %v2137_v31  ;;  %v3128_v31 = vld [vmem:[#allocation2 + $0x514] sm:$0xf0]  ;;  %v2681_v48 = vor.u32 %v3122_v35, %v2678_v36  ;;  %v3042_v21 = vld [vmem:[#allocation2 + $0x26c] sm:$0xf] }
  0x9e   :  { %1554 = vmatpush.bf16.msrb.mxu3 %v2773_v32  ;;  %2828 = vmatmul.msk.bf16.vlgmr.msra.gmra.mxu0 %vm1282_vm0, %v3336_v50  ;;  %v3090_v32 = vld [vmem:[#allocation2 + $0x3ec] sm:$0xf]  ;;  %v2693_v44 = vor.u32 %v3128_v31, %v2692_v26 }
  0x9f   :  { %1597 = vmatpush.bf16.msrb.mxu0 %v2249_v51  ;;  %v2553_v47 = vor.u32 %v3090_v32, %v2550_v33  ;;  %v2409_v51 = vor.u32 %v3054_v38, %v2406_v40  ;;  %v3142_v23 = vld [vmem:[#allocation2 + $0x58c] sm:$0xf]  ;;  %v2470_v40 = vld [vmem:[#allocation2 + $0x358] sm:$0xf0] }
  0xa0   :  { %1542 = vmatpush.bf16.msra.mxu1 %v2613_v49  ;;  %v3086_v49 = vld [vmem:[#allocation2 + $0x3cc] sm:$0xf] }
  0xa1   :  { %1583 = vmatpush.bf16.msrb.mxu2 %v2121_v45  ;;  %v3154_v45 = vld [vmem:[#allocation2 + $0x5ec] sm:$0xf]  ;;  %v2537_v0 = vor.u32 %v3086_v49, %v2534_v53 }
  0xa2   :  { %1555 = vmatpush.bf16.msrb.mxu3 %v2757_v46  ;;  %v2806_v46 = vld [vmem:[#allocation2 + $0x5f8] sm:$0xf0]  ;;  %v3074_v26 = vld [vmem:[#allocation2 + $0x36c] sm:$0xf] }
  0xa3   :  { %1598 = vmatpush.bf16.msrb.mxu0 %v2233_v2  ;;  %v2809_v58 = vor.u32 %v3154_v45, %v2806_v46  ;;  %v3082_v2 = vld [vmem:[#allocation2 + $0x3ac] sm:$0xf]  ;;  %v2489_v35 = vor.u32 %v3074_v26, %v2486_v28  ;;  %v2326_v46 = vld [vmem:[#allocation2 + $0x238] sm:$0xf0]  ;;  %v3167_v26 = vld [vmem:[#allocation4 + $0x30] sm:$0xff] }
  0xa4   :  { %1543 = vmatpush.bf16.msra.mxu1 %v2597_v1  ;;  %v2665_v1 = vor.u32 %v3118_v56, %v2662_v57  ;;  %v2521_v13 = vor.u32 %v3082_v2, %v2518_v4  ;;  %v3038_v32 = vld [vmem:[#allocation2 + $0x24c] sm:$0xf]  ;;  %v2454_v57 = vld [vmem:[#allocation2 + $0x338] sm:$0xf0] }
  0xa5   :  { %1584 = vmatpush.bf16.msrb.mxu2 %v2105_v61  ;;  %v2390_v61 = vld [vmem:[#allocation2 + $0x2b8] sm:$0xf0]  ;;  %v3138_v33 = vld [vmem:[#allocation2 + $0x56c] sm:$0xf] }
  0xa6   :  { %1556 = vmatpush.bf16.msrb.mxu3 %v2741_v62  ;;  %v3150_v62 = vld [vmem:[#allocation2 + $0x5cc] sm:$0xf]  ;;  %v2393_v3 = vor.u32 %v3050_v59, %v2390_v61  ;;  %v2582_v59 = vld [vmem:[#allocation2 + $0x438] sm:$0xf0] }
  0xa7   :  { %1599 = vmatpush.bf16.msrb.mxu0 %v2217_v15  ;;  %v2793_v7 = vor.u32 %v3150_v62, %v2790_v63  ;;  %v3078_v15 = vld [vmem:[#allocation2 + $0x38c] sm:$0xf]  ;;  %v2710_v2 = vld [vmem:[#allocation2 + $0x538] sm:$0xf0] }
  0xa8   :  { %1544 = vmatpush.bf16.msra.mxu1 %v2581_v14  ;;  %v2649_v14 = vor.u32 %v3114_v5, %v2646_v6  ;;  %v2505_v24 = vor.u32 %v3078_v15, %v2502_v17  ;;  %v3070_v38 = vld [vmem:[#allocation2 + $0x34c] sm:$0xf]  ;;  %v2822_v4 = vld [vmem:[#allocation2 + $0x618] sm:$0xf0] }
  0xa9   :  { %1585 = vmatpush.bf16.msrb.mxu2 %v2089_v10  ;;  %v2374_v10 = vld [vmem:[#allocation2 + $0x298] sm:$0xf0]  ;;  %v3034_v45 = vld [vmem:[#allocation2 + $0x22c] sm:$0xf]  ;;  %v2473_v49 = vor.u32 %v3070_v38, %v2470_v40 }
  0xaa   :  { %1557 = vmatpush.bf16.msrb.mxu3 %v2725_v11  ;;  %v3146_v11 = vld [vmem:[#allocation2 + $0x5ac] sm:$0xf]  ;;  %v2377_v16 = vor.u32 %v3046_v9, %v2374_v10  ;;  %v2329_v56 = vor.u32 %v3034_v45, %v2326_v46  ;;  %v3164_v40 = vld [vmem:[#allocation4 + $0x18] sm:$0xff]  ;;  %v3163_v46 = vld [vmem:[#allocation4 + $0x10] sm:$0xff] }
  0xab   :  { %1600 = vmatpush.bf16.msrb.mxu0 %v2201_v30  ;;  %v2777_v20 = vor.u32 %v3146_v11, %v2774_v12  ;;  %v2614_v30 = vld [vmem:[#allocation2 + $0x478] sm:$0xf0]  ;;  %v3030_v63 = vld [vmem:[#allocation2 + $0x20c] sm:$0xf] }
  0xac   :  { %1545 = vmatpush.bf16.msra.mxu1 %v2565_v29  ;;  %v3106_v29 = vld [vmem:[#allocation2 + $0x46c] sm:$0xf]  ;;  %v2438_v11 = vld [vmem:[#allocation2 + $0x318] sm:$0xf0] }
  0xad   :  { %1586 = vmatpush.bf16.msrb.mxu2 %v2073_v22  ;;  %v2358_v22 = vld [vmem:[#allocation2 + $0x278] sm:$0xf0]  ;;  %v2617_v36 = vor.u32 %v3106_v29, %v2614_v30  ;;  %v3062_v10 = vld [vmem:[#allocation2 + $0x30c] sm:$0xf] }
  0xae   :  { %1558 = vmatpush.bf16.msrb.mxu3 %v2709_v25  ;;  %v2633_v25 = vor.u32 %v3110_v18, %v2630_v19  ;;  %v2361_v27 = vor.u32 %v3042_v21, %v2358_v22  ;;  %v3126_v17 = vld [vmem:[#allocation2 + $0x50c] sm:$0xf]  ;;  %v2694_v18 = vld [vmem:[#allocation2 + $0x518] sm:$0xf0]  ;;  %v2441_v19 = vor.u32 %v3062_v10, %v2438_v11 }
  0xaf   :  { %1546 = vmatmul.bf16.vlgmr.msra.gmra.mxu1 %v3352_v37  ;;  %1601 = vmatpush.bf16.msrb.mxu0 %v2185_v52  ;;  %v3066_v52 = vld [vmem:[#allocation2 + $0x32c] sm:$0xf]  ;;  %v1295_v53 = vpop.f32.mrf.mxu0  ;;  %v3168_v21 = vld [vmem:[#allocation4 + $0x38] sm:$0xff] }
  0xb0   :  { %1608 = vmatpush.bf16.msrb.mxu1 %v2425_v34  ;;  %v2742_v34 = vld [vmem:[#allocation2 + $0x578] sm:$0xf0]  ;;  %v2457_v5 = vor.u32 %v3066_v52, %v2454_v57  ;;  %v3166_v30 = vld [vmem:[#allocation4 + $0x28] sm:$0xff] }
  0xb1   :  { %1587 = vmatpush.bf16.msrb.mxu2 %v2057_v39  ;;  %v3162_v52 = vld [vmem:[#allocation4 + $0x8] sm:$0xff] }
  0xb2   :  { %1559 = vmatpush.bf16.msrb.mxu3 %v2693_v44  ;;  %1602 = vmatmul.bf16.vlgmr.msrb.gmra.mxu0 %v3326_v8  ;;  %v2342_v8 = vld [vmem:[#allocation2 + $0x258] sm:$0xf0]  ;;  %v2745_v44 = vor.u32 %v3138_v33, %v2742_v34  ;;  %v1309_v61 = vpop.f32.mrf.mxu1  ;;  %v3165_v33 = vld [vmem:[#allocation4 + $0x20] sm:$0xff] }
  0xb3   :  { %1650 = vmatpush.bf16.msra.mxu0 %v2809_v58  ;;  %v2345_v39 = vor.u32 %v3038_v32, %v2342_v8  ;;  %v3098_v58 = vld [vmem:[#allocation2 + $0x42c] sm:$0xf] }
  0xb4   :  { %1609 = vmatpush.bf16.msrb.mxu1 %v2409_v51  ;;  %1588 = vmatmul.bf16.vlgmr.msrb.gmra.mxu2 %v3314_v55  ;;  %v2758_v55 = vld [vmem:[#allocation2 + $0x598] sm:$0xf0]  ;;  %v2601_v51 = vor.u32 %v3102_v41, %v2598_v43  ;;  %v2585_v6 = vor.u32 %v3098_v58, %v2582_v59  ;;  %v3175_v43 = vld [vmem:[#allocation4 + $0x70] sm:$0xff]  ;;  %v3161_v58 = vld [vmem:[#allocation4] sm:$0xff] }
  0xb5   :  { %1636 = vmatpush.bf16.msra.mxu2 %v2681_v48  ;;  %1560 = vmatmul.bf16.vlgmr.msrb.gmra.mxu3 %v3354_v42  ;;  %v2761_v31 = vor.u32 %v3142_v23, %v2758_v55  ;;  %v2726_v48 = vld [vmem:[#allocation2 + $0x558] sm:$0xf0]  ;;  %v2697_v23 = vor.u32 %v3126_v17, %v2694_v18 }
  0xb6   :  { %1622 = vmatpush.bf16.msra.mxu3 %v2553_v47  ;;  %v3134_v47 = vld [vmem:[#allocation2 + $0x54c] sm:$0xf] }
  0xb7   :  { %1651 = vmatpush.bf16.msra.mxu0 %v2793_v7  ;;  %v2729_v62 = vor.u32 %v3134_v47, %v2726_v48  ;;  %v1323_v7 = vpop.f32.mrf.mxu2  ;;  %v1297_v55 = vpop.f32.mrf.mxu0  ;;  %v3174_v48 = vld [vmem:[#allocation4 + $0x68] sm:$0xff] }
  0xb8   :  { %1610 = vmatpush.bf16.msrb.mxu1 %v2393_v3  ;;  %v3158_v3 = vld [vmem:[#allocation2 + $0x60c] sm:$0xf] }
  0xb9   :  { %1637 = vmatpush.bf16.msra.mxu2 %v2665_v1  ;;  %v3130_v1 = vld [vmem:[#allocation2 + $0x52c] sm:$0xf]  ;;  %v2825_v15 = vor.u32 %v3158_v3, %v2822_v4  ;;  %v3169_v4 = vld [vmem:[#allocation4 + $0x40] sm:$0xff] }
  0xba   :  { %1623 = vmatpush.bf16.msra.mxu3 %v2537_v0  ;;  %v2310_v0 = vld [vmem:[#allocation2 + $0x218] sm:$0xf0]  ;;  %v2713_v12 = vor.u32 %v3130_v1, %v2710_v2  ;;  %v3170_v1 = vld [vmem:[#allocation4 + $0x48] sm:$0xff] }
  0xbb   :  { %1652 = vmatpush.bf16.msra.mxu0 %v2777_v20  ;;  %v2313_v9 = vor.u32 %v3030_v63, %v2310_v0  ;;  %v3171_v0 = vld [vmem:[#allocation4 + $0x50] sm:$0xff] }
  0xbc   :  { %1611 = vmatpush.bf16.msrb.mxu1 %v2377_v16  ;;  %v3379_v16 = vld [vmem:[%s3402_s2] sm:$0xf] }
  0xbd   :  { %1638 = vmatpush.bf16.msra.mxu2 %v2649_v14  ;;  %v2566_v14 = vld [vmem:[#allocation2 + $0x418] sm:$0xf0]  ;;  %v259_v22 = vperm.slane %v3379_v16, 0 }
  0xbe   :  { %1624 = vmatpush.bf16.msra.mxu3 %v2521_v13  ;;  %v3094_v13 = vld [vmem:[#allocation2 + $0x40c] sm:$0xf] }
  0xbf   :  { %1653 = vmatpush.bf16.msra.mxu0 %v2761_v31  ;;  %v2569_v20 = vor.u32 %v3094_v13, %v2566_v14  ;;  %v1298_v28 = vadd.f32 %v1297_v55, %v259_v22  ;;  %v1325_v29 = vpop.f32.mrf.mxu2  ;;  %v3183_v55 = vld [vmem:[#allocation4 + $0xb0] sm:$0xff] }
  0xc0   :  { %1612 = vmatpush.bf16.msrb.mxu1 %v2361_v27  ;;  %v1296_v27 = vadd.f32 %v1295_v53, %v259_v22 }
  0xc1   :  { %1639 = vmatpush.bf16.msra.mxu2 %v2633_v25  ;;  %v1337_v25 = vpop.f32.mrf.mxu3 }
  0xc2   :  { %1625 = vmatpush.bf16.msra.mxu3 %v2505_v24  ;;  %v1311_v24 = vpop.f32.mrf.mxu1  ;;  %v1310_v31 = vadd.f32 %v1309_v61, %v1296_v27  ;;  %v3172_v61 = vld [vmem:[#allocation4 + $0x58] sm:$0xff] }
  0xc3   :  { %1654 = vmatpush.bf16.msra.mxu0 %v2745_v44  ;;  %v1312_v32 = vadd.f32 %v1311_v24, %v1298_v28 }
  0xc4   :  { %1613 = vmatpush.bf16.msrb.mxu1 %v2345_v39  ;;  %v1324_v34 = vadd.f32 %v1323_v7, %v1310_v31  ;;  %v3176_v39 = vld [vmem:[#allocation4 + $0x78] sm:$0xff]  ;;  %v260_v7 = vperm.slane %v3379_v16, 1 }
  0xc5   :  { %1640 = vmatpush.bf16.msra.mxu2 %v2617_v36 }
  0xc6   :  { %1626 = vmatpush.bf16.msra.mxu3 %v2489_v35  ;;  %v1326_v35 = vadd.f32 %v1325_v29, %v1312_v32 }
  0xc7   :  { %1655 = vmatpush.bf16.msra.mxu0 %v2729_v62  ;;  %v1379_v38 = vpop.f32.mrf.mxu2 }
  0xc8   :  { %1614 = vmatpush.bf16.msrb.mxu1 %v2329_v56  ;;  %v3173_v56 = vld [vmem:[#allocation4 + $0x60] sm:$0xff] }
  0xc9   :  { %1641 = vmatpush.bf16.msra.mxu2 %v2601_v51  ;;  %v1339_v36 = vpop.f32.mrf.mxu3 }
  0xca   :  { %1627 = vmatpush.bf16.msra.mxu3 %v2473_v49 }
  0xcb   :  { %1656 = vmatpush.bf16.msra.mxu0 %v2713_v12 }
  0xcc   :  { %1615 = vmatpush.bf16.msrb.mxu1 %v2313_v9  ;;  %v1365_v8 = vpop.f32.mrf.mxu1 }
  0xcd   :  { %1642 = vmatpush.bf16.msra.mxu2 %v2585_v6 }
  0xce   :  { %1628 = vmatpush.bf16.msra.mxu3 %v2457_v5 }
  0xcf   :  { %1616 = vmatmul.bf16.vlgmr.msrb.gmra.mxu1 %v3312_v54  ;;  %1657 = vmatpush.bf16.msra.mxu0 %v2697_v23  ;;  %v1351_v54 = vpop.f32.mrf.mxu0  ;;  %v1381_v51 = vpop.f32.mrf.mxu2 }
  0xd0   :  { %1671 = vmatpush.bf16.msra.mxu1 %v2825_v15 }
  0xd1   :  { %1643 = vmatpush.bf16.msra.mxu2 %v2569_v20 }
  0xd2   :  { %1629 = vmatpush.bf16.msra.mxu3 %v2441_v19  ;;  %1658 = vmatmul.bf16.vlgmr.msra.gmra.mxu0 %v3354_v42 }
  0xd4   :  { %1644 = vmatmul.bf16.vlgmr.msra.gmra.mxu2 %v3352_v37  ;;  %1964 = vmatpush.bf16.msrb.mxu1 %v3176_v39  ;;  %v1340_v37 = vadd.f32 %v1339_v36, %v1326_v35  ;;  %v1367_v45 = vpop.f32.mrf.mxu1 }
  0xd5   :  { %1630 = vmatmul.bf16.vlgmr.msra.gmra.mxu3 %v3316_v60  ;;  %v1338_v60 = vadd.f32 %v1337_v25, %v1324_v34 }
  0xd6   :  { %1950 = vmatpush.bf16.msrb.mxu3 %v3168_v21  ;;  %v3184_v21 = vld [vmem:[#allocation4 + $0xb8] sm:$0xff] }
  0xd7   :  { %v1353_v41 = vpop.f32.mrf.mxu0  ;;  %v1352_v42 = vadd.f32 %v1351_v54, %v1338_v60  ;;  %v1407_v2 = vpop.f32.mrf.mxu2  ;;  %1978 = vmatpush.bf16.msrb.mxu2 %v3184_v21  ;;  %v3181_v54 = vld [vmem:[#allocation4 + $0xa0] sm:$0xff] }
  0xd8   :  { %v1354_v44 = vadd.f32 %v1353_v41, %v1340_v37  ;;  %1965 = vmatpush.bf16.msrb.mxu1 %v3175_v43  ;;  %v3178_v37 = vld [vmem:[#allocation4 + $0x88] sm:$0xff]  ;;  %v3177_v41 = vld [vmem:[#allocation4 + $0x80] sm:$0xff] }
  0xd9   :  { %v1366_v49 = vadd.f32 %v1365_v8, %v1352_v42 }
  0xda   :  { %1951 = vmatpush.bf16.msrb.mxu3 %v3167_v26  ;;  %v1368_v47 = vadd.f32 %v1367_v45, %v1354_v44  ;;  %v261_v44 = vperm.slane %v3379_v16, 2 }
  0xdb   :  { %v1380_v57 = vadd.f32 %v1379_v38, %v1366_v49  ;;  %1979 = vmatpush.bf16.msrb.mxu2 %v3183_v55  ;;  %v3180_v38 = vld [vmem:[#allocation4 + $0x98] sm:$0xff] }
  0xdc   :  { %1966 = vmatpush.bf16.msrb.mxu1 %v3174_v48  ;;  %v1382_v53 = vadd.f32 %v1381_v51, %v1368_v47  ;;  %v3191_v48 = vld [vmem:[#allocation4 + $0xf0] sm:$0xff] }
  0xdd   :  { %v1678_v62 = vmax.f32 %v1380_v57, 0.0 }
  0xde   :  { %1952 = vmatpush.bf16.msrb.mxu3 %v3166_v30  ;;  %v1682_v59 = vmax.f32 %v1382_v53, 0.0  ;;  %v3182_v30 = vld [vmem:[#allocation4 + $0xa8] sm:$0xff] }
  0xdf   :  { %2829 = vmatmul.msk.bf16.vlgmr.msra.gmra.mxu1 %vm1282_vm0, %v3336_v50  ;;  %v1393_v50 = vpop.f32.mrf.mxu3  ;;  %v1409_v9 = vpop.f32.mrf.mxu2  ;;  %1980 = vmatpush.bf16.msrb.mxu2 %v3182_v30 }
  0xe0   :  { %1967 = vmatpush.bf16.msrb.mxu1 %v3173_v56  ;;  %v1686_v63 = vpack.c.bf16 %v1682_v59, %v1678_v62  ;;  %v1394_v11 = vadd.f32 %v1393_v50, %v260_v7 }
  0xe2   :  { %1953 = vmatpush.bf16.msrb.mxu3 %v3165_v33  ;;  %v1408_v14 = vadd.f32 %v1407_v2, %v1394_v11 }
  0xe3   :  { %1981 = vmatpush.bf16.msrb.mxu2 %v3181_v54 }
  0xe4   :  { %1968 = vmatpush.bf16.msrb.mxu1 %v3172_v61  ;;  %v3189_v61 = vld [vmem:[#allocation4 + $0xe0] sm:$0xff] }
  0xe6   :  { %1954 = vmatpush.bf16.msrb.mxu3 %v3164_v40  ;;  %v3179_v40 = vld [vmem:[#allocation4 + $0x90] sm:$0xff] }
  0xe7   :  { %v1395_v3 = vpop.f32.mrf.mxu3  ;;  %1982 = vmatpush.bf16.msrb.mxu2 %v3180_v38 }
  0xe8   :  { %1969 = vmatpush.bf16.msrb.mxu1 %v3171_v0  ;;  %v1396_v12 = vadd.f32 %v1395_v3, %v260_v7 }
  0xea   :  { %1955 = vmatpush.bf16.msrb.mxu3 %v3163_v46  ;;  %v1410_v18 = vadd.f32 %v1409_v9, %v1396_v12  ;;  %v3192_v46 = vld [vmem:[#allocation4 + $0xf8] sm:$0xff] }
  0xeb   :  { %v1421_v5 = vpop.f32.mrf.mxu0  ;;  %1983 = vmatpush.bf16.msrb.mxu2 %v3179_v40  ;;  %1992 = vmatpush.bf16.msrb.mxu0 %v3192_v46 }
  0xec   :  { %1970 = vmatpush.bf16.msrb.mxu1 %v3170_v1  ;;  %v1435_v10 = vpop.f32.mrf.mxu1  ;;  %v1422_v19 = vadd.f32 %v1421_v5, %v1408_v14 }
  0xee   :  { %1956 = vmatpush.bf16.msrb.mxu3 %v3162_v52  ;;  %v1436_v23 = vadd.f32 %v1435_v10, %v1422_v19  ;;  %v3187_v10 = vld [vmem:[#allocation4 + $0xd0] sm:$0xff] }
  0xef   :  { %1984 = vmatpush.bf16.msrb.mxu2 %v3178_v37  ;;  %1993 = vmatpush.bf16.msrb.mxu0 %v3191_v48 }
  0xf0   :  { %1971 = vmatpush.bf16.msrb.mxu1 %v3169_v4  ;;  %v3188_v4 = vld [vmem:[#allocation4 + $0xd8] sm:$0xff] }
  0xf2   :  { %1957 = vmatpush.bf16.msrb.mxu3 %v3161_v58  ;;  %v3190_v58 = vld [vmem:[#allocation4 + $0xe8] sm:$0xff] }
  0xf3   :  { %v1423_v15 = vpop.f32.mrf.mxu0  ;;  %1985 = vmatpush.bf16.msrb.mxu2 %v3177_v41  ;;  %1994 = vmatpush.bf16.msrb.mxu0 %v3190_v58 }
  0xf4   :  { %v1449_v6 = vpop.f32.mrf.mxu3  ;;  %v1424_v20 = vadd.f32 %v1423_v15, %v1410_v18  ;;  %v1437_v22 = vpop.f32.mrf.mxu1 }
  0xf5   :  { %1958 = vmatmul.bf16.vlgmr.msrb.gmra.mxu3 %v1686_v63  ;;  %v1450_v25 = vadd.f32 %v1449_v6, %v1436_v23  ;;  %v262_v23 = vperm.slane %v3379_v16, 3 }
  0xf6   :  { %v1438_v26 = vadd.f32 %v1437_v22, %v1424_v20  ;;  %v3185_v22 = vld [vmem:[#allocation4 + $0xc0] sm:$0xff] }
  0xf7   :  { %v1463_v17 = vpop.f32.mrf.mxu2  ;;  %1995 = vmatpush.bf16.msrb.mxu0 %v3189_v61 }
  0xf8   :  { %v1464_v29 = vadd.f32 %v1463_v17, %v1450_v25  ;;  %v3186_v17 = vld [vmem:[#allocation4 + $0xc8] sm:$0xff] }
  0xfb   :  { %1996 = vmatpush.bf16.msrb.mxu0 %v3188_v4 }
  0xfc   :  { %v1451_v13 = vpop.f32.mrf.mxu3 }
  0xfd   :  { %v1452_v27 = vadd.f32 %v1451_v13, %v1438_v26 }
  0xff   :  { %v1465_v28 = vpop.f32.mrf.mxu2  ;;  %1997 = vmatpush.bf16.msrb.mxu0 %v3187_v10 }
 0x100   :  { %v1466_v31 = vadd.f32 %v1465_v28, %v1452_v27 }
 0x103   :  { %1998 = vmatpush.bf16.msrb.mxu0 %v3186_v17 }
 0x104   :  { %v1477_v24 = vpop.f32.mrf.mxu3 }
 0x105   :  { %v1478_v32 = vadd.f32 %v1477_v24, %v1464_v29 }
 0x107   :  { %v1679_v34 = vmax.f32 %v1478_v32, 0.0  ;;  %1999 = vmatpush.bf16.msrb.mxu0 %v3185_v22 }
 0x10b   :  { %v1519_v39 = vpop.f32.mrf.mxu0 }
 0x10c   :  { %v1479_v8 = vpop.f32.mrf.mxu3  ;;  %v1491_v60 = vpop.f32.mrf.mxu1 }
 0x10d   :  { %v1480_v33 = vadd.f32 %v1479_v8, %v1466_v31  ;;  %v1492_v47 = vadd.f32 %v1491_v60, %v261_v44 }
 0x10f   :  { %v1683_v35 = vmax.f32 %v1480_v33, 0.0 }
 0x111   :  { %v1687_v36 = vpack.c.bf16 %v1683_v35, %v1679_v34 }
 0x113   :  { %1972 = vmatmul.bf16.vlgmr.msrb.gmra.mxu1 %v1687_v36  ;;  %v1521_v42 = vpop.f32.mrf.mxu0 }
 0x114   :  { %v1493_v45 = vpop.f32.mrf.mxu1 }
 0x115   :  { %v1494_v56 = vadd.f32 %v1493_v45, %v261_v44 }
 0x117   :  { %v1533_v51 = vpop.f32.mrf.mxu2 }
 0x118   :  { %v1505_v43 = vpop.f32.mrf.mxu3 }
 0x119   :  { %v1506_v53 = vadd.f32 %v1505_v43, %v1492_v47 }
 0x11b   :  { %v1575_v49 = vpop.f32.mrf.mxu0  ;;  %v1520_v59 = vadd.f32 %v1519_v39, %v1506_v53 }
 0x11d   :  { %v1534_v63 = vadd.f32 %v1533_v51, %v1520_v59 }
 0x11f   :  { %v1535_v2 = vpop.f32.mrf.mxu2 }
 0x120   :  { %v1507_v52 = vpop.f32.mrf.mxu3 }
 0x121   :  { %v1508_v50 = vadd.f32 %v1507_v52, %v1494_v56 }
 0x123   :  { %v1522_v0 = vadd.f32 %v1521_v42, %v1508_v50  ;;  %v1577_v1 = vpop.f32.mrf.mxu0 }
 0x125   :  { %v1536_v6 = vadd.f32 %v1535_v2, %v1522_v0 }
 0x12c   :  { %v1547_v57 = vpop.f32.mrf.mxu1 }
 0x12d   :  { %v1548_v3 = vadd.f32 %v1547_v57, %v1534_v63 }
 0x12f   :  { %v1603_v15 = vpop.f32.mrf.mxu0 }
 0x134   :  { %v1549_v5 = vpop.f32.mrf.mxu1 }
 0x135   :  { %v1550_v9 = vadd.f32 %v1549_v5, %v1536_v6 }
 0x137   :  { %v1589_v18 = vpop.f32.mrf.mxu2  ;;  %v1605_v25 = vpop.f32.mrf.mxu0 }
 0x138   :  { %v1561_v62 = vpop.f32.mrf.mxu3  ;;  %v1590_v24 = vadd.f32 %v1589_v18, %v262_v23 }
 0x139   :  { %v1562_v7 = vadd.f32 %v1561_v62, %v1548_v3 }
 0x13a   :  { %v1604_v27 = vadd.f32 %v1603_v15, %v1590_v24 }
 0x13b   :  { %v1576_v12 = vadd.f32 %v1575_v49, %v1562_v7  ;;  %v3199_v49 = vld [vmem:[%s3404_s4] ss:$0 sm:$0xff] }
 0x13d   :  { %v1680_v19 = vmax.f32 %v1576_v12, 0.0 }
 0x13f   :  { %v1591_v26 = vpop.f32.mrf.mxu2 }
 0x140   :  { %v1563_v11 = vpop.f32.mrf.mxu3  ;;  %v1592_v31 = vadd.f32 %v1591_v26, %v262_v23 }
 0x141   :  { %v1564_v13 = vadd.f32 %v1563_v11, %v1550_v9 }
 0x142   :  { %v1606_v33 = vadd.f32 %v1605_v25, %v1592_v31 }
 0x143   :  { %v1578_v14 = vadd.f32 %v1577_v1, %v1564_v13 }
 0x145   :  { %v1684_v20 = vmax.f32 %v1578_v14, 0.0 }
 0x147   :  { %v1688_v21 = vpack.c.bf16 %v1684_v20, %v1680_v19 }
 0x149   :  { %1986 = vmatmul.bf16.vlgmr.msrb.gmra.mxu2 %v1688_v21 }
 0x14c   :  { %v1617_v55 = vpop.f32.mrf.mxu1 }
 0x14d   :  { %v1618_v29 = vadd.f32 %v1617_v55, %v1604_v27 }
 0x14f   :  { %v1659_v54 = vpop.f32.mrf.mxu0 }
 0x154   :  { %v1619_v28 = vpop.f32.mrf.mxu1 }
 0x155   :  { %v1620_v35 = vadd.f32 %v1619_v28, %v1606_v33 }
 0x157   :  { %v1645_v32 = vpop.f32.mrf.mxu2  ;;  %v1661_v37 = vpop.f32.mrf.mxu0 }
 0x158   :  { %v1631_v30 = vpop.f32.mrf.mxu3 }
 0x159   :  { %v1632_v8 = vadd.f32 %v1631_v30, %v1618_v29 }
 0x15b   :  { %v1646_v34 = vadd.f32 %v1645_v32, %v1632_v8 }
 0x15c   :  { %v1673_v36 = vpop.f32.mrf.mxu1 }
 0x15d   :  { %v1660_v39 = vadd.f32 %v1659_v54, %v1646_v34 }
 0x15f   :  { %v1647_v40 = vpop.f32.mrf.mxu2  ;;  %v1674_v43 = vadd.f32 %v1673_v36, %v1660_v39 }
 0x160   :  { %v1633_v38 = vpop.f32.mrf.mxu3 }
 0x161   :  { %v1634_v16 = vadd.f32 %v1633_v38, %v1620_v35  ;;  %v1681_v45 = vmax.f32 %v1674_v43, 0.0 }
 0x163   :  { %v1648_v60 = vadd.f32 %v1647_v40, %v1634_v16 }
 0x164   :  { %v1675_v42 = vpop.f32.mrf.mxu1 }
 0x165   :  { %v1662_v41 = vadd.f32 %v1661_v37, %v1648_v60 }
 0x167   :  { %v1676_v44 = vadd.f32 %v1675_v42, %v1662_v41 }
 0x169   :  { %v1685_v46 = vmax.f32 %v1676_v44, 0.0 }
 0x16b   :  { %v1689_v47 = vpack.c.bf16 %v1685_v46, %v1681_v45 }
 0x16d   :  { %2000 = vmatmul.bf16.vlgmr.msrb.gmra.mxu0 %v1689_v47 }
 0x178   :  { %v1959_v48 = vpop.f32.mrf.mxu3 }
 0x179   :  { %v1960_v53 = vadd.f32 %v3199_v49, %v1959_v48 }
 0x180   :  { %v1961_v58 = vpop.f32.mrf.mxu3 }
 0x181   :  { %v1962_v62 = vadd.f32 %v3199_v49, %v1961_v58 }
 0x190   :  { %v1973_v51 = vpop.f32.mrf.mxu1 }
 0x191   :  { %v1974_v56 = vadd.f32 %v1973_v51, %v1960_v53 }
 0x198   :  { %v1975_v61 = vpop.f32.mrf.mxu1 }
 0x199   :  { %v1976_v0 = vadd.f32 %v1975_v61, %v1962_v62 }
 0x1cc   :  { %v1987_v52 = vpop.f32.mrf.mxu2 }
 0x1cd   :  { %v1988_v57 = vadd.f32 %v1987_v52, %v1974_v56 }
 0x1d4   :  { %v1989_v63 = vpop.f32.mrf.mxu2 }
 0x1d5   :  { %v1990_v1 = vadd.f32 %v1989_v63, %v1976_v0 }
 0x1ea   :  { %v2001_v59 = vpop.f32.mrf.mxu0 }
 0x1eb   :  { %v2002_v50 = vadd.f32 %v2001_v59, %v1988_v57 }
 0x1ed   :  { %2006 = vst [vmem:[%s3405_s5] sm:$0xff] %v2002_v50 }
 0x1f2   :  { %v2003_v2 = vpop.f32.mrf.mxu0 }
 0x1f3   :  { %v2004_v3 = vadd.f32 %v2003_v2, %v1990_v1 }
 0x1f5   :  { %2007 = vst [vmem:[%s3405_s5 + $0x8] sm:$0xff] %v2004_v3 }
 0x1f6   :  { %2012 = vsyncpa [#allocation3], 1 }
 0x1f7   :  { %2013 = vsyncpa [#allocation5], 1 }

</bundles_post_ra>
